<compile_context>
chip_gen: v6e
topology: v6e:2x2x1
jax: 0.10.0
libtpu: 0.0.40
codegen_flags: <defaults>
</compile_context>

<pallas_src>
import math
import functools

import numpy as np
import jax
import jax.numpy as jnp
from jax import lax  # noqa: F401  (kept for parity with reference patterns)
from jax.experimental import pallas as pl
from jax.experimental.pallas import tpu as pltpu

_MIB = 1024 * 1024


def _vmem_capacity_bytes():
    try:
        return int(pltpu.get_tpu_info().vmem_capacity_bytes)
    except Exception:
        return 128 * _MIB            # v5e / v6e class default


def _q_tile_candidates(S):
    return [t for t in range(S, 0, -1) if S % t == 0 and (t % 8 == 0 or t == S)]


def _split_heads(x, num_heads, head_dim):
    """(rows, H) -> (num_heads, rows, head_dim) head-major stack.

    Implemented as a stack of static lane slices (simple copies) so it lowers
    robustly; it is layout glue run once per batch row (K/V) or per q tile (Q).
    """
    return jnp.stack(
        [x[:, h * head_dim:(h + 1) * head_dim] for h in range(num_heads)], axis=0)


def _merge_heads(x):
    """(num_heads, rows, head_dim) -> (rows, num_heads * head_dim)."""
    return jnp.concatenate([x[h] for h in range(x.shape[0])], axis=-1)


# ----------------------------------------------------------------------------
# Kernels
# ----------------------------------------------------------------------------
def _attn_kernel(*refs, has_mask, cache_kv):
    if has_mask:
        (x_ref, wq_ref, bq_ref, wk_ref, bk_ref, wv_ref, bv_ref, mask_ref,
         ctx_ref, probs_ref, k_scr, v_scr) = refs
    else:
        (x_ref, wq_ref, bq_ref, wk_ref, bk_ref, wv_ref, bv_ref,
         ctx_ref, probs_ref, k_scr, v_scr) = refs
        mask_ref = None

    tq = ctx_ref.shape[1]
    nh = probs_ref.shape[1]
    hd = k_scr.shape[2]
    qi = pl.program_id(1)

    def project_kv():
        x = x_ref[0]                                                   # (S, H) bf16
        k = jnp.dot(x, wk_ref[...], preferred_element_type=jnp.float32) + bk_ref[...]
        v = jnp.dot(x, wv_ref[...], preferred_element_type=jnp.float32) + bv_ref[...]
        # One-time head-major relayout: the per-tile score / context matmuls
        # become head-batched MXU ops with no per-head lane sub-slicing.
        return (_split_heads(k, nh, hd).astype(jnp.bfloat16),
                _split_heads(v, nh, hd).astype(jnp.bfloat16))

    if cache_kv:
        # K/V projected once per batch row, cached across the q-tile axis.
        @pl.when(qi == 0)
        def _():
            k_hm, v_hm = project_kv()
            k_scr[...] = k_hm
            v_scr[...] = v_hm
        k = k_scr[...]
        v = v_scr[...]
    else:
        # q axis is megacore-parallel (B == 1): no cross-tile scratch carry.
        k, v = project_kv()

    # Q projection for this tile (1/sqrt(hd) already folded into wq / bq).
    q0 = pl.multiple_of(qi * tq, tq)                 # tile-aligned dynamic start
    xq = x_ref[0, pl.ds(q0, tq), :]                                    # (tq, H) bf16
    q = jnp.dot(xq, wq_ref[...], preferred_element_type=jnp.float32) + bq_ref[...]
    q = _split_heads(q, nh, hd).astype(jnp.bfloat16)                   # (nh, tq, hd)

    # Head-batched scores: (nh, tq, hd) x (nh, S, hd) -> (nh, tq, S).
    scores = jnp.einsum("ntd,nsd->nts", q, k,
                        preferred_element_type=jnp.float32)
    if mask_ref is not None:
        scores = scores + mask_ref[0]        # compact mask broadcasts to (nh,tq,S)

    # Softmax in f32; exact reciprocal because the probs are returned (and feed
    # later GCT stacks as priors), so rows must sum to 1.
    m = jnp.max(scores, axis=-1, keepdims=True)
    e = jnp.exp(scores - m)
    denom = jnp.sum(e, axis=-1, keepdims=True)
    probs = e * pl.reciprocal(denom)
    probs_ref[0] = probs.astype(probs_ref.dtype)     # ONE lane-dense (nh,tq,S) store

    # Head-batched context: (nh, tq, S) x (nh, S, hd) -> (nh, tq, hd).
    ctx = jnp.einsum("nts,nsd->ntd", probs.astype(jnp.bfloat16), v,
                     preferred_element_type=jnp.float32)
    # Merge heads and do a single lane-dense (tq, H) store.
    ctx_ref[0] = _merge_heads(ctx).astype(ctx_ref.dtype)


def _prior_attn_kernel(x_ref, wv_ref, bv_ref, prior_ref, ctx_ref, v_scr, *, cache_kv):
    # stack_idx == 0 with prior: probs are identical across heads, so
    # concat_h(prior @ V_h) == prior @ V (one full-width matmul).
    qi = pl.program_id(1)

    def project_v():
        x = x_ref[0]                                                   # (S, H) bf16
        v = jnp.dot(x, wv_ref[...], preferred_element_type=jnp.float32) + bv_ref[...]
        return v.astype(jnp.bfloat16)

    if cache_kv:
        @pl.when(qi == 0)
        def _():
            v_scr[...] = project_v()
        v = v_scr[...]
    else:
        v = project_v()

    p = prior_ref[0]                                                   # (tq, S) bf16
    ctx_ref[0] = jnp.dot(p, v, preferred_element_type=jnp.float32).astype(ctx_ref.dtype)


# ----------------------------------------------------------------------------
# Wrapper
# ----------------------------------------------------------------------------
def self_attention(hidden_states, params, *, num_heads, stack_idx,
                   attention_mask=None, guide_mask=None, prior=None,
                   q_tile=None, probs_dtype=jnp.float32, output_attentions=True):
    """Pallas implementation of SelfAttention.forward.

    Returns (context_layer [B, S, H], attention_probs [B, nh, S, S]) or
    (context_layer,) when output_attentions=False.  guide_mask is accepted but
    unused, exactly like the PyTorch module.
    """
    del guide_mask
    B, S, H = hidden_states.shape
    nh = num_heads
    if H % nh:
        raise ValueError("hidden_size must be divisible by num_heads")
    hd = H // nh
    inv_sqrt_d = 1.0 / math.sqrt(hd)

    x_bf = hidden_states.astype(jnp.bfloat16)

    # PyTorch Linear: y = x @ W.T + b with W [out, in]; pre-transpose to
    # [in, out], cast to bf16 (MXU-native), and fold 1/sqrt(hd) into wq/bq.
    wq = (params["wq"].astype(jnp.float32).T * inv_sqrt_d).astype(jnp.bfloat16)
    wk = params["wk"].astype(jnp.float32).T.astype(jnp.bfloat16)
    wv = params["wv"].astype(jnp.float32).T.astype(jnp.bfloat16)
    bq = (params["bq"].astype(jnp.float32) * inv_sqrt_d).reshape(1, H)
    bk = params["bk"].astype(jnp.float32).reshape(1, H)
    bv = params["bv"].astype(jnp.float32).reshape(1, H)

    cap = _vmem_capacity_bytes()
    limit_cap = (cap * 3) // 4             # ~96 MiB on v5e/v6e, ~48 MiB on v7x
    probs_bytes = jnp.dtype(probs_dtype).itemsize

    prior_path = (stack_idx == 0) and (prior is not None)

    # --- mask normalization: keep it compact, never materialize (B,nh,S,S) ----
    mask = None
    mb = mh = mq = 0
    if (not prior_path) and (attention_mask is not None):
        mask = jnp.asarray(attention_mask, jnp.float32)
        while mask.ndim < 4:
            mask = mask[None]
        if mask.ndim != 4:
            raise ValueError(f"unsupported attention_mask rank {attention_mask.ndim}")
        mb, mh, mq, mk = mask.shape
        if (mb not in (1, B) or mh not in (1, nh)
                or mq not in (1, S) or mk not in (1, S)):
            raise ValueError(f"attention_mask shape {attention_mask.shape} is not "
                             f"broadcastable to {(B, nh, S, S)}")
        mask = jnp.broadcast_to(mask, (mb, mh, mq, S))   # only the key dim widened

    # --- VMEM-driven q-tile selection (generation-aware: v7x has 64 MiB) ------
    def est(tq, wbuf):
        b = 2 * S * H * 2                               # x row (bf16, double-buffered)
        b += wbuf * 3 * (H * H * 2 + 8 * max(H, 128) * 4)   # weights + padded biases
        b += 2 * tq * H * 4                             # ctx output block
        b += 4 * tq * H * 4                             # q / ctx merge temporaries
        if prior_path:
            b += S * H * 2                              # V scratch
            b += S * H * 4                              # qi==0 projection temporary
            b += 2 * tq * S * 2                         # prior block (bf16)
        else:
            b += 2 * S * H * 2                          # K + V scratch
            b += 2 * S * H * 4                          # qi==0 projection temporaries
            b += 2 * nh * tq * S * probs_bytes          # probs output block
            b += 3 * nh * tq * S * 4                    # f32 scores/exp/probs temps
            if mask is not None:
                b += 2 * mh * (tq if mq == S else 1) * S * 4
        return b

    if q_tile is not None:
        tq = int(q_tile)
        if tq >= S:
            tq = S
        else:
            assert S % tq == 0 and tq % 8 == 0, "q_tile must divide S, multiple of 8"
    else:
        cands = _q_tile_candidates(S)
        tq = next((t for t in cands if est(t, 1) <= limit_cap), cands[-1])
    nq = S // tq

    def vmem_limit(wbuf):
        need = est(tq, wbuf)
        return int(min(limit_cap, max(32 * _MIB, need + need // 4 + 4 * _MIB)))

    # Megacore: with B == 1 the batch axis alone cannot feed both v7x
    # TensorCores, so split the q axis instead and recompute K/V per tile
    # (drops the cross-tile scratch carry so "parallel" stays legal).
    split_q = (B == 1 and nq > 1)
    cache_kv = not split_q
    dims = ("parallel", "parallel") if split_q else ("parallel", "arbitrary")

    x_spec = pl.BlockSpec((1, S, H), lambda b, q: (b, 0, 0))
    ctx_spec = pl.BlockSpec((1, tq, H), lambda b, q: (b, q, 0))

    def const_spec(shape, buffer_weights):
        # Weights / biases never change across the grid; single-buffer them so
        # default double-buffering does not waste VMEM (frees room for bigger tq).
        idx = lambda b, q: (0,) * len(shape)
        if buffer_weights:
            return pl.BlockSpec(shape, idx, pipeline_mode=pl.Buffered(1))
        return pl.BlockSpec(shape, idx)

    # --- stack_idx == 0 with prior --------------------------------------------
    if prior_path:
        prior_f32 = jnp.asarray(prior, jnp.float32).reshape(B, S, S)
        prior_bf = prior_f32.astype(jnp.bfloat16)        # halves the per-tile DMA
        prior_spec = pl.BlockSpec((1, tq, S), lambda b, q: (b, q, 0))

        def run_prior(buffer_weights):
            return pl.pallas_call(
                functools.partial(_prior_attn_kernel, cache_kv=cache_kv),
                out_shape=jax.ShapeDtypeStruct((B, S, H), jnp.float32),
                grid_spec=pltpu.PrefetchScalarGridSpec(
                    num_scalar_prefetch=0,
                    grid=(B, nq),
                    in_specs=[x_spec,
                              const_spec((H, H), buffer_weights),
                              const_spec((1, H), buffer_weights),
                              prior_spec],
                    out_specs=ctx_spec,
                    scratch_shapes=[pltpu.VMEM((S, H), jnp.bfloat16)]),
                compiler_params=pltpu.CompilerParams(
                    dimension_semantics=dims,
                    vmem_limit_bytes=vmem_limit(1 if buffer_weights else 2)),
            )(x_bf, wv, bv, prior_bf)

        try:
            ctx = run_prior(True)
        except Exception:   # pl.Buffered(1) unsupported -> default double buffering
            ctx = run_prior(False)

        if not output_attentions:
            return (ctx,)
        # PyTorch does prior[:, None].expand(-1, nh, -1, -1): pure layout glue.
        # TODO(synk): consumers that accept the compact (B, S, S) prior should use
        # it directly and skip this nh-fold HBM materialization.
        probs = jnp.broadcast_to(prior_f32[:, None, :, :], (B, nh, S, S))
        return ctx, probs

    # --- regular attention path ------------------------------------------------
    probs_spec = pl.BlockSpec((1, nh, tq, S), lambda b, q: (b, 0, q, 0))

    def run_attn(buffer_weights):
        in_specs = [x_spec,
                    const_spec((H, H), buffer_weights), const_spec((1, H), buffer_weights),
                    const_spec((H, H), buffer_weights), const_spec((1, H), buffer_weights),
                    const_spec((H, H), buffer_weights), const_spec((1, H), buffer_weights)]
        args = [x_bf, wq, bq, wk, bk, wv, bv]
        if mask is not None:
            mq_blk = tq if mq == S else 1

            def mask_idx(b, q, _mb=mb, _mq=mq):
                return (b if _mb == B else 0, 0, q if _mq == S else 0, 0)

            in_specs.append(pl.BlockSpec((1, mh, mq_blk, S), mask_idx))
            args.append(mask)

        kernel = functools.partial(_attn_kernel, has_mask=mask is not None,
                                   cache_kv=cache_kv)
        return pl.pallas_call(
            kernel,
            out_shape=(jax.ShapeDtypeStruct((B, S, H), jnp.float32),
                       jax.ShapeDtypeStruct((B, nh, S, S), probs_dtype)),
            grid_spec=pltpu.PrefetchScalarGridSpec(
                num_scalar_prefetch=0,
                grid=(B, nq),
                in_specs=in_specs,
                out_specs=[ctx_spec, probs_spec],
                scratch_shapes=[pltpu.VMEM((nh, S, hd), jnp.bfloat16),
                                pltpu.VMEM((nh, S, hd), jnp.bfloat16)]),
            compiler_params=pltpu.CompilerParams(
                dimension_semantics=dims,
                vmem_limit_bytes=vmem_limit(1 if buffer_weights else 2)),
        )(*args)

    try:
        ctx, probs = run_attn(True)
    except Exception:       # pl.Buffered(1) unsupported -> default double buffering
        ctx, probs = run_attn(False)

    if not output_attentions:
        return (ctx,)
    return ctx, probs


# ----------------------------------------------------------------------------
# Pure-JAX (f32) reference for validation
# ----------------------------------------------------------------------------
def _reference(hidden_states, params, num_heads, stack_idx,
               attention_mask=None, prior=None):
    B, S, H = hidden_states.shape
    hd = H // num_heads

    def lin(x, w, b):
        return x @ w.T + b

    def heads(x):
        return x.reshape(B, S, num_heads, hd).transpose(0, 2, 1, 3)

    v = heads(lin(hidden_states, params["wv"], params["bv"]))
    if stack_idx == 0 and prior is not None:
        probs = jnp.broadcast_to(prior[:, None, :, :], (B, num_heads, S, S))
    else:
        q = heads(lin(hidden_states, params["wq"], params["bq"]))
        k = heads(lin(hidden_states, params["wk"], params["bk"]))
        scores = jnp.einsum("bhqd,bhkd->bhqk", q, k) / math.sqrt(hd)
        if attention_mask is not None:
            scores = scores + attention_mask
        probs = jax.nn.softmax(scores, axis=-1)
    ctx = jnp.einsum("bhqk,bhkd->bhqd", probs, v)
    ctx = ctx.transpose(0, 2, 1, 3).reshape(B, S, H)
    return ctx, probs


# ----------------------------------------------------------------------------
if __name__ == "__main__":
    def make_params(key, H):
        ks = jax.random.split(key, 6)
        scale = 1.0 / math.sqrt(H)
        return {
            "wq": jax.random.normal(ks[0], (H, H), jnp.float32) * scale,
            "bq": jax.random.normal(ks[1], (H,), jnp.float32) * 0.1,
            "wk": jax.random.normal(ks[2], (H, H), jnp.float32) * scale,
            "bk": jax.random.normal(ks[3], (H,), jnp.float32) * 0.1,
            "wv": jax.random.normal(ks[4], (H, H), jnp.float32) * scale,
            "bv": jax.random.normal(ks[5], (H,), jnp.float32) * 0.1,
        }

    # Kernel uses bf16 MXU inputs (f32 accumulation / softmax) while the
    # reference is pure f32, so compare with bf16-level tolerance.
    TOL = dict(atol=7e-2, rtol=7e-2)

    key = jax.random.PRNGKey(0)
    kp, kx, km, kpr, kx2 = jax.random.split(key, 5)

    B, S, H, NH = 2, 8, 32, 4        # batch, seq, hidden, heads -> head_dim = 8
    params = make_params(kp, H)
    hidden = jax.random.normal(kx, (B, S, H), jnp.float32)
    # Compact BERT-style additive key mask (B, 1, 1, S): 0 / -1e4.
    attn_mask = (jax.random.bernoulli(km, 0.9, (B, 1, 1, S)).astype(jnp.float32)
                 - 1.0) * 1e4
    prior = jax.nn.softmax(jax.random.normal(kpr, (B, S, S), jnp.float32), -1)

    # --- path 1: normal attention (stack_idx != 0) with compact additive mask --
    ctx, probs = self_attention(hidden, params, num_heads=NH, stack_idx=1,
                                attention_mask=attn_mask)
    jax.block_until_ready((ctx, probs))
    ctx_r, probs_r = _reference(hidden, params, NH, 1, attention_mask=attn_mask)
    assert np.allclose(np.asarray(ctx), np.asarray(ctx_r), **TOL)
    assert np.allclose(np.asarray(probs), np.asarray(probs_r), **TOL)

    # --- path 2: no mask, bf16 probs-writeback knob -----------------------------
    ctx_nm, probs_nm = self_attention(hidden, params, num_heads=NH, stack_idx=1,
                                      probs_dtype=jnp.bfloat16)
    jax.block_until_ready((ctx_nm, probs_nm))
    ctx_nmr, probs_nmr = _reference(hidden, params, NH, 1)
    assert probs_nm.dtype == jnp.bfloat16
    assert np.allclose(np.asarray(ctx_nm), np.asarray(ctx_nmr), **TOL)
    assert np.allclose(np.asarray(probs_nm.astype(jnp.float32)),
                       np.asarray(probs_nmr), **TOL)

    # --- path 3: stack_idx == 0 with prior --------------------------------------
    ctx_p, probs_p = self_attention(hidden, params, num_heads=NH, stack_idx=0,
                                    prior=prior)
    jax.block_until_ready((ctx_p, probs_p))
    ctx_pr, probs_pr = _reference(hidden, params, NH, 0, prior=prior)
    assert np.allclose(np.asarray(ctx_p), np.asarray(ctx_pr), **TOL)
    assert np.allclose(np.asarray(probs_p), np.asarray(probs_pr),
                       atol=1e-6, rtol=1e-6)    # exact: pure broadcast of prior

    # --- path 4: B == 1, multiple q tiles (megacore split) + per-query mask -----
    S2 = 16
    hidden2 = jax.random.normal(kx2, (1, S2, H), jnp.float32)
    mask2 = jnp.triu(jnp.full((S2, S2), -1e4, jnp.float32), k=1)[None, None]
    ctx_s, probs_s = self_attention(hidden2, params, num_heads=NH, stack_idx=1,
                                    attention_mask=mask2, q_tile=8)
    jax.block_until_ready((ctx_s, probs_s))
    ctx_sr, probs_sr = _reference(hidden2, params, NH, 1, attention_mask=mask2)
    assert np.allclose(np.asarray(ctx_s), np.asarray(ctx_sr), **TOL)
    assert np.allclose(np.asarray(probs_s), np.asarray(probs_sr), **TOL)

    print("KERNEL_OK")
</pallas_src>

<mosaic_0001>
module attributes {stable_mosaic.version = 11 : i64} {
  func.func @_attn_kernel(%arg0: i32, %arg1: i32, %arg2: memref<1x8x32xbf16, #tpu.memory_space<vmem>>, %arg3: memref<32x32xbf16, #tpu.memory_space<vmem>>, %arg4: memref<1x32xf32, #tpu.memory_space<vmem>>, %arg5: memref<32x32xbf16, #tpu.memory_space<vmem>>, %arg6: memref<1x32xf32, #tpu.memory_space<vmem>>, %arg7: memref<32x32xbf16, #tpu.memory_space<vmem>>, %arg8: memref<1x32xf32, #tpu.memory_space<vmem>>, %arg9: memref<1x1x1x8xf32, #tpu.memory_space<vmem>>, %arg10: memref<1x8x32xf32, #tpu.memory_space<vmem>>, %arg11: memref<1x4x8x8xf32, #tpu.memory_space<vmem>>, %arg12: memref<4x8x8xbf16, #tpu.memory_space<vmem>>, %arg13: memref<4x8x8xbf16, #tpu.memory_space<vmem>>) attributes {dimension_semantics = [#tpu.dimension_semantics<parallel>, #tpu.dimension_semantics<arbitrary>], iteration_bounds = array<i64: 2, 1>, scalar_prefetch = 0 : i64, scratch_operands = 2 : i64, tpu.core_type = #tpu.core_type<tc>, window_params = [{transform_indices = @transform_0, window_bounds = array<i64: 1, 8, 32>}, {pipeline_mode = #tpu.pipeline_mode<synchronous>, transform_indices = @transform_1, window_bounds = array<i64: 32, 32>}, {pipeline_mode = #tpu.pipeline_mode<synchronous>, transform_indices = @transform_2, window_bounds = array<i64: 1, 32>}, {pipeline_mode = #tpu.pipeline_mode<synchronous>, transform_indices = @transform_3, window_bounds = array<i64: 32, 32>}, {pipeline_mode = #tpu.pipeline_mode<synchronous>, transform_indices = @transform_4, window_bounds = array<i64: 1, 32>}, {pipeline_mode = #tpu.pipeline_mode<synchronous>, transform_indices = @transform_5, window_bounds = array<i64: 32, 32>}, {pipeline_mode = #tpu.pipeline_mode<synchronous>, transform_indices = @transform_6, window_bounds = array<i64: 1, 32>}, {transform_indices = @transform_7, window_bounds = array<i64: 1, 1, 1, 8>}, {transform_indices = @transform_8, window_bounds = array<i64: 1, 8, 32>}, {transform_indices = @transform_9, window_bounds = array<i64: 1, 4, 8, 8>}]} {
    %c0_i32 = arith.constant 0 : i32
    %0 = arith.cmpi eq, %arg1, %c0_i32 : i32
    %1 = arith.extui %0 : i1 to i32
    %c0_i32_0 = arith.constant 0 : i32
    %2 = arith.cmpi ne, %1, %c0_i32_0 : i32
    scf.if %2 {
      %c0_27 = arith.constant 0 : index
      %c0_28 = arith.constant 0 : index
      %c0_29 = arith.constant 0 : index
      %57 = vector.load %arg2[%c0_27, %c0_28, %c0_29] : memref<1x8x32xbf16, #tpu.memory_space<vmem>>, vector<1x8x32xbf16>
      %58 = vector.shape_cast %57 : vector<1x8x32xbf16> to vector<8x32xbf16>
      %c0_30 = arith.constant 0 : index
      %c0_31 = arith.constant 0 : index
      %59 = vector.load %arg5[%c0_30, %c0_31] : memref<32x32xbf16, #tpu.memory_space<vmem>>, vector<32x32xbf16>
      %cst_32 = arith.constant dense<0.000000e+00> : vector<8x32xf32>
      %60 = tpu.matmul %58, %59, %cst_32 {dimension_numbers = #tpu.dot_dimension_numbers<[1], [0], [0], [1], [0, 0, 1, 1], [], []>} : vector<8x32xbf16>, vector<32x32xbf16>, vector<8x32xf32> -> vector<8x32xf32>
      %c0_33 = arith.constant 0 : index
      %c0_34 = arith.constant 0 : index
      %61 = vector.load %arg6[%c0_33, %c0_34] : memref<1x32xf32, #tpu.memory_space<vmem>>, vector<1x32xf32>
      %62 = vector.broadcast %61 : vector<1x32xf32> to vector<8x32xf32>
      %63 = arith.addf %60, %62 : vector<8x32xf32>
      %c0_35 = arith.constant 0 : index
      %c0_36 = arith.constant 0 : index
      %64 = vector.load %arg7[%c0_35, %c0_36] : memref<32x32xbf16, #tpu.memory_space<vmem>>, vector<32x32xbf16>
      %cst_37 = arith.constant dense<0.000000e+00> : vector<8x32xf32>
      %65 = tpu.matmul %58, %64, %cst_37 {dimension_numbers = #tpu.dot_dimension_numbers<[1], [0], [0], [1], [0, 0, 1, 1], [], []>} : vector<8x32xbf16>, vector<32x32xbf16>, vector<8x32xf32> -> vector<8x32xf32>
      %c0_38 = arith.constant 0 : index
      %c0_39 = arith.constant 0 : index
      %66 = vector.load %arg8[%c0_38, %c0_39] : memref<1x32xf32, #tpu.memory_space<vmem>>, vector<1x32xf32>
      %67 = vector.broadcast %66 : vector<1x32xf32> to vector<8x32xf32>
      %68 = arith.addf %65, %67 : vector<8x32xf32>
      %69 = vector.extract_strided_slice %63 {offsets = [0, 0], sizes = [8, 8], strides = [1, 1]} : vector<8x32xf32> to vector<8x8xf32>
      %70 = vector.extract_strided_slice %63 {offsets = [0, 8], sizes = [8, 8], strides = [1, 1]} : vector<8x32xf32> to vector<8x8xf32>
      %71 = vector.extract_strided_slice %63 {offsets = [0, 16], sizes = [8, 8], strides = [1, 1]} : vector<8x32xf32> to vector<8x8xf32>
      %72 = vector.extract_strided_slice %63 {offsets = [0, 24], sizes = [8, 8], strides = [1, 1]} : vector<8x32xf32> to vector<8x8xf32>
      %73 = vector.shape_cast %69 : vector<8x8xf32> to vector<1x8x8xf32>
      %74 = vector.shape_cast %70 : vector<8x8xf32> to vector<1x8x8xf32>
      %75 = vector.shape_cast %71 : vector<8x8xf32> to vector<1x8x8xf32>
      %76 = vector.shape_cast %72 : vector<8x8xf32> to vector<1x8x8xf32>
      %77 = tpu.concatenate %73, %74, %75, %76 in 0 : vector<1x8x8xf32>, vector<1x8x8xf32>, vector<1x8x8xf32>, vector<1x8x8xf32> -> vector<4x8x8xf32>
      %78 = arith.truncf %77 : vector<4x8x8xf32> to vector<4x8x8xbf16>
      %79 = vector.extract_strided_slice %68 {offsets = [0, 0], sizes = [8, 8], strides = [1, 1]} : vector<8x32xf32> to vector<8x8xf32>
      %80 = vector.extract_strided_slice %68 {offsets = [0, 8], sizes = [8, 8], strides = [1, 1]} : vector<8x32xf32> to vector<8x8xf32>
      %81 = vector.extract_strided_slice %68 {offsets = [0, 16], sizes = [8, 8], strides = [1, 1]} : vector<8x32xf32> to vector<8x8xf32>
      %82 = vector.extract_strided_slice %68 {offsets = [0, 24], sizes = [8, 8], strides = [1, 1]} : vector<8x32xf32> to vector<8x8xf32>
      %83 = vector.shape_cast %79 : vector<8x8xf32> to vector<1x8x8xf32>
      %84 = vector.shape_cast %80 : vector<8x8xf32> to vector<1x8x8xf32>
      %85 = vector.shape_cast %81 : vector<8x8xf32> to vector<1x8x8xf32>
      %86 = vector.shape_cast %82 : vector<8x8xf32> to vector<1x8x8xf32>
      %87 = tpu.concatenate %83, %84, %85, %86 in 0 : vector<1x8x8xf32>, vector<1x8x8xf32>, vector<1x8x8xf32>, vector<1x8x8xf32> -> vector<4x8x8xf32>
      %88 = arith.truncf %87 : vector<4x8x8xf32> to vector<4x8x8xbf16>
      %c0_40 = arith.constant 0 : index
      %c0_41 = arith.constant 0 : index
      %c0_42 = arith.constant 0 : index
      %89 = vector.load %arg12[%c0_40, %c0_41, %c0_42] : memref<4x8x8xbf16, #tpu.memory_space<vmem>>, vector<4x8x8xbf16>
      tpu.vector_store %arg12[%c0_40, %c0_41, %c0_42], %78 {strides = array<i32>} : memref<4x8x8xbf16, #tpu.memory_space<vmem>>, vector<4x8x8xbf16>,
      %c0_43 = arith.constant 0 : index
      %c0_44 = arith.constant 0 : index
      %c0_45 = arith.constant 0 : index
      %90 = vector.load %arg13[%c0_43, %c0_44, %c0_45] : memref<4x8x8xbf16, #tpu.memory_space<vmem>>, vector<4x8x8xbf16>
      tpu.vector_store %arg13[%c0_43, %c0_44, %c0_45], %88 {strides = array<i32>} : memref<4x8x8xbf16, #tpu.memory_space<vmem>>, vector<4x8x8xbf16>,
    } else {
    }
    %c0 = arith.constant 0 : index
    %c0_1 = arith.constant 0 : index
    %c0_2 = arith.constant 0 : index
    %3 = vector.load %arg12[%c0, %c0_1, %c0_2] : memref<4x8x8xbf16, #tpu.memory_space<vmem>>, vector<4x8x8xbf16>
    %c0_3 = arith.constant 0 : index
    %c0_4 = arith.constant 0 : index
    %c0_5 = arith.constant 0 : index
    %4 = vector.load %arg13[%c0_3, %c0_4, %c0_5] : memref<4x8x8xbf16, #tpu.memory_space<vmem>>, vector<4x8x8xbf16>
    %c8_i32 = arith.constant 8 : i32
    %5 = arith.muli %arg1, %c8_i32 : i32
    %6 = tpu.assume_multiple %5, 8 : i32
    %c0_6 = arith.constant 0 : index
    %7 = arith.index_cast %6 : i32 to index
    %c0_7 = arith.constant 0 : index
    %8 = vector.load %arg2[%c0_6, %7, %c0_7] : memref<1x8x32xbf16, #tpu.memory_space<vmem>>, vector<1x8x32xbf16>
    %9 = vector.shape_cast %8 : vector<1x8x32xbf16> to vector<8x32xbf16>
    %c0_8 = arith.constant 0 : index
    %c0_9 = arith.constant 0 : index
    %10 = vector.load %arg3[%c0_8, %c0_9] : memref<32x32xbf16, #tpu.memory_space<vmem>>, vector<32x32xbf16>
    %cst = arith.constant dense<0.000000e+00> : vector<8x32xf32>
    %11 = tpu.matmul %9, %10, %cst {dimension_numbers = #tpu.dot_dimension_numbers<[1], [0], [0], [1], [0, 0, 1, 1], [], []>} : vector<8x32xbf16>, vector<32x32xbf16>, vector<8x32xf32> -> vector<8x32xf32>
    %c0_10 = arith.constant 0 : index
    %c0_11 = arith.constant 0 : index
    %12 = vector.load %arg4[%c0_10, %c0_11] : memref<1x32xf32, #tpu.memory_space<vmem>>, vector<1x32xf32>
    %13 = vector.broadcast %12 : vector<1x32xf32> to vector<8x32xf32>
    %14 = arith.addf %11, %13 : vector<8x32xf32>
    %15 = vector.extract_strided_slice %14 {offsets = [0, 0], sizes = [8, 8], strides = [1, 1]} : vector<8x32xf32> to vector<8x8xf32>
    %16 = vector.extract_strided_slice %14 {offsets = [0, 8], sizes = [8, 8], strides = [1, 1]} : vector<8x32xf32> to vector<8x8xf32>
    %17 = vector.extract_strided_slice %14 {offsets = [0, 16], sizes = [8, 8], strides = [1, 1]} : vector<8x32xf32> to vector<8x8xf32>
    %18 = vector.extract_strided_slice %14 {offsets = [0, 24], sizes = [8, 8], strides = [1, 1]} : vector<8x32xf32> to vector<8x8xf32>
    %19 = vector.shape_cast %15 : vector<8x8xf32> to vector<1x8x8xf32>
    %20 = vector.shape_cast %16 : vector<8x8xf32> to vector<1x8x8xf32>
    %21 = vector.shape_cast %17 : vector<8x8xf32> to vector<1x8x8xf32>
    %22 = vector.shape_cast %18 : vector<8x8xf32> to vector<1x8x8xf32>
    %23 = tpu.concatenate %19, %20, %21, %22 in 0 : vector<1x8x8xf32>, vector<1x8x8xf32>, vector<1x8x8xf32>, vector<1x8x8xf32> -> vector<4x8x8xf32>
    %24 = arith.truncf %23 : vector<4x8x8xf32> to vector<4x8x8xbf16>
    "tpu.trace_start"() <{level = 10 : i32, message = "ntd,nsd->nts"}> : () -> ()
    %cst_12 = arith.constant dense<0.000000e+00> : vector<4x8x8xf32>
    %25 = tpu.matmul %24, %3, %cst_12 {dimension_numbers = #tpu.dot_dimension_numbers<[2], [2], [1], [1], [0, 0, 0, 1, 1, 1], [0], [0]>} : vector<4x8x8xbf16>, vector<4x8x8xbf16>, vector<4x8x8xf32> -> vector<4x8x8xf32>
    "tpu.trace_stop"() : () -> ()
    %c0_13 = arith.constant 0 : index
    %c0_14 = arith.constant 0 : index
    %c0_15 = arith.constant 0 : index
    %c0_16 = arith.constant 0 : index
    %26 = vector.load %arg9[%c0_13, %c0_14, %c0_15, %c0_16] : memref<1x1x1x8xf32, #tpu.memory_space<vmem>>, vector<1x1x1x8xf32>
    %27 = vector.shape_cast %26 : vector<1x1x1x8xf32> to vector<1x1x8xf32>
    %28 = vector.broadcast %27 : vector<1x1x8xf32> to vector<4x8x8xf32>
    %29 = arith.addf %25, %28 : vector<4x8x8xf32>
    %cst_17 = arith.constant dense<0xFF800000> : vector<4x8xf32>
    %30 = vector.multi_reduction <maximumf>, %29, %cst_17 [2] : vector<4x8x8xf32> to vector<4x8xf32>
    %31 = vector.shape_cast %30 : vector<4x8xf32> to vector<4x8x1xf32>
    %32 = vector.broadcast %31 : vector<4x8x1xf32> to vector<4x8x8xf32>
    %33 = arith.subf %29, %32 : vector<4x8x8xf32>
    %34 = math.exp %33 : vector<4x8x8xf32>
    %cst_18 = arith.constant dense<0.000000e+00> : vector<4x8xf32>
    %35 = vector.multi_reduction <add>, %34, %cst_18 [2] : vector<4x8x8xf32> to vector<4x8xf32>
    %36 = vector.shape_cast %35 : vector<4x8xf32> to vector<4x8x1xf32>
    %37 = tpu.reciprocal %36 : vector<4x8x1xf32> -> vector<4x8x1xf32>
    %38 = vector.broadcast %37 : vector<4x8x1xf32> to vector<4x8x8xf32>
    %39 = arith.mulf %34, %38 : vector<4x8x8xf32>
    %c0_19 = arith.constant 0 : index
    %c0_20 = arith.constant 0 : index
    %c0_21 = arith.constant 0 : index
    %c0_22 = arith.constant 0 : index
    %40 = vector.load %arg11[%c0_19, %c0_20, %c0_21, %c0_22] : memref<1x4x8x8xf32, #tpu.memory_space<vmem>>, vector<1x4x8x8xf32>
    %41 = vector.shape_cast %40 : vector<1x4x8x8xf32> to vector<4x8x8xf32>
    %42 = vector.shape_cast %39 : vector<4x8x8xf32> to vector<1x4x8x8xf32>
    tpu.vector_store %arg11[%c0_19, %c0_20, %c0_21, %c0_22], %42 {strides = array<i32>} : memref<1x4x8x8xf32, #tpu.memory_space<vmem>>, vector<1x4x8x8xf32>,
    %43 = arith.truncf %39 : vector<4x8x8xf32> to vector<4x8x8xbf16>
    "tpu.trace_start"() <{level = 10 : i32, message = "nts,nsd->ntd"}> : () -> ()
    %cst_23 = arith.constant dense<0.000000e+00> : vector<4x8x8xf32>
    %44 = tpu.matmul %43, %4, %cst_23 {dimension_numbers = #tpu.dot_dimension_numbers<[2], [1], [1], [2], [0, 0, 0, 1, 1, 2], [0], [0]>} : vector<4x8x8xbf16>, vector<4x8x8xbf16>, vector<4x8x8xf32> -> vector<4x8x8xf32>
    "tpu.trace_stop"() : () -> ()
    %45 = vector.extract_strided_slice %44 {offsets = [0, 0, 0], sizes = [1, 8, 8], strides = [1, 1, 1]} : vector<4x8x8xf32> to vector<1x8x8xf32>
    %46 = vector.shape_cast %45 : vector<1x8x8xf32> to vector<8x8xf32>
    %47 = vector.extract_strided_slice %44 {offsets = [1, 0, 0], sizes = [1, 8, 8], strides = [1, 1, 1]} : vector<4x8x8xf32> to vector<1x8x8xf32>
    %48 = vector.shape_cast %47 : vector<1x8x8xf32> to vector<8x8xf32>
    %49 = vector.extract_strided_slice %44 {offsets = [2, 0, 0], sizes = [1, 8, 8], strides = [1, 1, 1]} : vector<4x8x8xf32> to vector<1x8x8xf32>
    %50 = vector.shape_cast %49 : vector<1x8x8xf32> to vector<8x8xf32>
    %51 = vector.extract_strided_slice %44 {offsets = [3, 0, 0], sizes = [1, 8, 8], strides = [1, 1, 1]} : vector<4x8x8xf32> to vector<1x8x8xf32>
    %52 = vector.shape_cast %51 : vector<1x8x8xf32> to vector<8x8xf32>
    %53 = tpu.concatenate %46, %48, %50, %52 in 1 : vector<8x8xf32>, vector<8x8xf32>, vector<8x8xf32>, vector<8x8xf32> -> vector<8x32xf32>
    %c0_24 = arith.constant 0 : index
    %c0_25 = arith.constant 0 : index
    %c0_26 = arith.constant 0 : index
    %54 = vector.load %arg10[%c0_24, %c0_25, %c0_26] : memref<1x8x32xf32, #tpu.memory_space<vmem>>, vector<1x8x32xf32>
    %55 = vector.shape_cast %54 : vector<1x8x32xf32> to vector<8x32xf32>
    %56 = vector.shape_cast %53 : vector<8x32xf32> to vector<1x8x32xf32>
    tpu.vector_store %arg10[%c0_24, %c0_25, %c0_26], %56 {strides = array<i32>} : memref<1x8x32xf32, #tpu.memory_space<vmem>>, vector<1x8x32xf32>,
    return
  }
  func.func @transform_0(%arg0: i32, %arg1: i32) -> (i32, i32, i32) {
    %c0_i32 = arith.constant 0 : i32
    %c0_i32_0 = arith.constant 0 : i32
    %c0_i32_1 = arith.constant 0 : i32
    return %arg0, %c0_i32, %c0_i32_0 : i32, i32, i32
  }
  func.func @transform_1(%arg0: i32, %arg1: i32) -> (i32, i32) {
    %c0_i32 = arith.constant 0 : i32
    %c0_i32_0 = arith.constant 0 : i32
    %c0_i32_1 = arith.constant 0 : i32
    return %c0_i32, %c0_i32_0 : i32, i32
  }
  func.func @transform_2(%arg0: i32, %arg1: i32) -> (i32, i32) {
    %c0_i32 = arith.constant 0 : i32
    %c0_i32_0 = arith.constant 0 : i32
    %c0_i32_1 = arith.constant 0 : i32
    return %c0_i32, %c0_i32_0 : i32, i32
  }
  func.func @transform_3(%arg0: i32, %arg1: i32) -> (i32, i32) {
    %c0_i32 = arith.constant 0 : i32
    %c0_i32_0 = arith.constant 0 : i32
    %c0_i32_1 = arith.constant 0 : i32
    return %c0_i32, %c0_i32_0 : i32, i32
  }
  func.func @transform_4(%arg0: i32, %arg1: i32) -> (i32, i32) {
    %c0_i32 = arith.constant 0 : i32
    %c0_i32_0 = arith.constant 0 : i32
    %c0_i32_1 = arith.constant 0 : i32
    return %c0_i32, %c0_i32_0 : i32, i32
  }
  func.func @transform_5(%arg0: i32, %arg1: i32) -> (i32, i32) {
    %c0_i32 = arith.constant 0 : i32
    %c0_i32_0 = arith.constant 0 : i32
    %c0_i32_1 = arith.constant 0 : i32
    return %c0_i32, %c0_i32_0 : i32, i32
  }
  func.func @transform_6(%arg0: i32, %arg1: i32) -> (i32, i32) {
    %c0_i32 = arith.constant 0 : i32
    %c0_i32_0 = arith.constant 0 : i32
    %c0_i32_1 = arith.constant 0 : i32
    return %c0_i32, %c0_i32_0 : i32, i32
  }
  func.func @transform_7(%arg0: i32, %arg1: i32) -> (i32, i32, i32, i32) {
    %c0_i32 = arith.constant 0 : i32
    %c0_i32_0 = arith.constant 0 : i32
    %c0_i32_1 = arith.constant 0 : i32
    %c0_i32_2 = arith.constant 0 : i32
    return %arg0, %c0_i32, %c0_i32_0, %c0_i32_1 : i32, i32, i32, i32
  }
  func.func @transform_8(%arg0: i32, %arg1: i32) -> (i32, i32, i32) {
    %c0_i32 = arith.constant 0 : i32
    %c0_i32_0 = arith.constant 0 : i32
    return %arg0, %arg1, %c0_i32 : i32, i32, i32
  }
  func.func @transform_9(%arg0: i32, %arg1: i32) -> (i32, i32, i32, i32) {
    %c0_i32 = arith.constant 0 : i32
    %c0_i32_0 = arith.constant 0 : i32
    %c0_i32_1 = arith.constant 0 : i32
    return %arg0, %c0_i32, %arg1, %c0_i32_0 : i32, i32, i32, i32
  }
}

module attributes {stable_mosaic.version = 11 : i64} {
  func.func @_attn_kernel(%arg0: i32, %arg1: i32, %arg2: memref<1x8x32xbf16, #tpu.memory_space<vmem>>, %arg3: memref<32x32xbf16, #tpu.memory_space<vmem>>, %arg4: memref<1x32xf32, #tpu.memory_space<vmem>>, %arg5: memref<32x32xbf16, #tpu.memory_space<vmem>>, %arg6: memref<1x32xf32, #tpu.memory_space<vmem>>, %arg7: memref<32x32xbf16, #tpu.memory_space<vmem>>, %arg8: memref<1x32xf32, #tpu.memory_space<vmem>>, %arg9: memref<1x1x1x8xf32, #tpu.memory_space<vmem>>, %arg10: memref<1x8x32xf32, #tpu.memory_space<vmem>>, %arg11: memref<1x4x8x8xf32, #tpu.memory_space<vmem>>, %arg12: memref<4x8x8xbf16, #tpu.memory_space<vmem>>, %arg13: memref<4x8x8xbf16, #tpu.memory_space<vmem>>) attributes {dimension_semantics = [#tpu.dimension_semantics<parallel>, #tpu.dimension_semantics<arbitrary>], iteration_bounds = array<i64: 2, 1>, scalar_prefetch = 0 : i64, scratch_operands = 2 : i64, tpu.core_type = #tpu.core_type<tc>, window_params = [{transform_indices = @transform_0, window_bounds = array<i64: 1, 8, 32>}, {pipeline_mode = #tpu.pipeline_mode<synchronous>, transform_indices = @transform_1, window_bounds = array<i64: 32, 32>}, {pipeline_mode = #tpu.pipeline_mode<synchronous>, transform_indices = @transform_2, window_bounds = array<i64: 1, 32>}, {pipeline_mode = #tpu.pipeline_mode<synchronous>, transform_indices = @transform_3, window_bounds = array<i64: 32, 32>}, {pipeline_mode = #tpu.pipeline_mode<synchronous>, transform_indices = @transform_4, window_bounds = array<i64: 1, 32>}, {pipeline_mode = #tpu.pipeline_mode<synchronous>, transform_indices = @transform_5, window_bounds = array<i64: 32, 32>}, {pipeline_mode = #tpu.pipeline_mode<synchronous>, transform_indices = @transform_6, window_bounds = array<i64: 1, 32>}, {transform_indices = @transform_7, window_bounds = array<i64: 1, 1, 1, 8>}, {transform_indices = @transform_8, window_bounds = array<i64: 1, 8, 32>}, {transform_indices = @transform_9, window_bounds = array<i64: 1, 4, 8, 8>}]} {
    %c0_i32 = arith.constant 0 : i32
    %0 = arith.cmpi eq, %arg1, %c0_i32 : i32
    %1 = arith.extui %0 : i1 to i32
    %c0_i32_0 = arith.constant 0 : i32
    %2 = arith.cmpi ne, %1, %c0_i32_0 : i32
    scf.if %2 {
      %c0_27 = arith.constant 0 : index
      %c0_28 = arith.constant 0 : index
      %c0_29 = arith.constant 0 : index
      %57 = vector.load %arg2[%c0_27, %c0_28, %c0_29] : memref<1x8x32xbf16, #tpu.memory_space<vmem>>, vector<1x8x32xbf16>
      %58 = vector.shape_cast %57 : vector<1x8x32xbf16> to vector<8x32xbf16>
      %c0_30 = arith.constant 0 : index
      %c0_31 = arith.constant 0 : index
      %59 = vector.load %arg5[%c0_30, %c0_31] : memref<32x32xbf16, #tpu.memory_space<vmem>>, vector<32x32xbf16>
      %cst_32 = arith.constant dense<0.000000e+00> : vector<8x32xf32>
      %60 = tpu.matmul %58, %59, %cst_32 {dimension_numbers = #tpu.dot_dimension_numbers<[1], [0], [0], [1], [0, 0, 1, 1], [], []>} : vector<8x32xbf16>, vector<32x32xbf16>, vector<8x32xf32> -> vector<8x32xf32>
      %c0_33 = arith.constant 0 : index
      %c0_34 = arith.constant 0 : index
      %61 = vector.load %arg6[%c0_33, %c0_34] : memref<1x32xf32, #tpu.memory_space<vmem>>, vector<1x32xf32>
      %62 = vector.broadcast %61 : vector<1x32xf32> to vector<8x32xf32>
      %63 = arith.addf %60, %62 : vector<8x32xf32>
      %c0_35 = arith.constant 0 : index
      %c0_36 = arith.constant 0 : index
      %64 = vector.load %arg7[%c0_35, %c0_36] : memref<32x32xbf16, #tpu.memory_space<vmem>>, vector<32x32xbf16>
      %cst_37 = arith.constant dense<0.000000e+00> : vector<8x32xf32>
      %65 = tpu.matmul %58, %64, %cst_37 {dimension_numbers = #tpu.dot_dimension_numbers<[1], [0], [0], [1], [0, 0, 1, 1], [], []>} : vector<8x32xbf16>, vector<32x32xbf16>, vector<8x32xf32> -> vector<8x32xf32>
      %c0_38 = arith.constant 0 : index
      %c0_39 = arith.constant 0 : index
      %66 = vector.load %arg8[%c0_38, %c0_39] : memref<1x32xf32, #tpu.memory_space<vmem>>, vector<1x32xf32>
      %67 = vector.broadcast %66 : vector<1x32xf32> to vector<8x32xf32>
      %68 = arith.addf %65, %67 : vector<8x32xf32>
      %69 = vector.extract_strided_slice %63 {offsets = [0, 0], sizes = [8, 8], strides = [1, 1]} : vector<8x32xf32> to vector<8x8xf32>
      %70 = vector.extract_strided_slice %63 {offsets = [0, 8], sizes = [8, 8], strides = [1, 1]} : vector<8x32xf32> to vector<8x8xf32>
      %71 = vector.extract_strided_slice %63 {offsets = [0, 16], sizes = [8, 8], strides = [1, 1]} : vector<8x32xf32> to vector<8x8xf32>
      %72 = vector.extract_strided_slice %63 {offsets = [0, 24], sizes = [8, 8], strides = [1, 1]} : vector<8x32xf32> to vector<8x8xf32>
      %73 = vector.shape_cast %69 : vector<8x8xf32> to vector<1x8x8xf32>
      %74 = vector.shape_cast %70 : vector<8x8xf32> to vector<1x8x8xf32>
      %75 = vector.shape_cast %71 : vector<8x8xf32> to vector<1x8x8xf32>
      %76 = vector.shape_cast %72 : vector<8x8xf32> to vector<1x8x8xf32>
      %77 = tpu.concatenate %73, %74, %75, %76 in 0 : vector<1x8x8xf32>, vector<1x8x8xf32>, vector<1x8x8xf32>, vector<1x8x8xf32> -> vector<4x8x8xf32>
      %78 = arith.truncf %77 : vector<4x8x8xf32> to vector<4x8x8xbf16>
      %79 = vector.extract_strided_slice %68 {offsets = [0, 0], sizes = [8, 8], strides = [1, 1]} : vector<8x32xf32> to vector<8x8xf32>
      %80 = vector.extract_strided_slice %68 {offsets = [0, 8], sizes = [8, 8], strides = [1, 1]} : vector<8x32xf32> to vector<8x8xf32>
      %81 = vector.extract_strided_slice %68 {offsets = [0, 16], sizes = [8, 8], strides = [1, 1]} : vector<8x32xf32> to vector<8x8xf32>
      %82 = vector.extract_strided_slice %68 {offsets = [0, 24], sizes = [8, 8], strides = [1, 1]} : vector<8x32xf32> to vector<8x8xf32>
      %83 = vector.shape_cast %79 : vector<8x8xf32> to vector<1x8x8xf32>
      %84 = vector.shape_cast %80 : vector<8x8xf32> to vector<1x8x8xf32>
      %85 = vector.shape_cast %81 : vector<8x8xf32> to vector<1x8x8xf32>
      %86 = vector.shape_cast %82 : vector<8x8xf32> to vector<1x8x8xf32>
      %87 = tpu.concatenate %83, %84, %85, %86 in 0 : vector<1x8x8xf32>, vector<1x8x8xf32>, vector<1x8x8xf32>, vector<1x8x8xf32> -> vector<4x8x8xf32>
      %88 = arith.truncf %87 : vector<4x8x8xf32> to vector<4x8x8xbf16>
      %c0_40 = arith.constant 0 : index
      %c0_41 = arith.constant 0 : index
      %c0_42 = arith.constant 0 : index
      %89 = vector.load %arg12[%c0_40, %c0_41, %c0_42] : memref<4x8x8xbf16, #tpu.memory_space<vmem>>, vector<4x8x8xbf16>
      tpu.vector_store %arg12[%c0_40, %c0_41, %c0_42], %78 {strides = array<i32>} : memref<4x8x8xbf16, #tpu.memory_space<vmem>>, vector<4x8x8xbf16>,
      %c0_43 = arith.constant 0 : index
      %c0_44 = arith.constant 0 : index
      %c0_45 = arith.constant 0 : index
      %90 = vector.load %arg13[%c0_43, %c0_44, %c0_45] : memref<4x8x8xbf16, #tpu.memory_space<vmem>>, vector<4x8x8xbf16>
      tpu.vector_store %arg13[%c0_43, %c0_44, %c0_45], %88 {strides = array<i32>} : memref<4x8x8xbf16, #tpu.memory_space<vmem>>, vector<4x8x8xbf16>,
    } else {
    }
    %c0 = arith.constant 0 : index
    %c0_1 = arith.constant 0 : index
    %c0_2 = arith.constant 0 : index
    %3 = vector.load %arg12[%c0, %c0_1, %c0_2] : memref<4x8x8xbf16, #tpu.memory_space<vmem>>, vector<4x8x8xbf16>
    %c0_3 = arith.constant 0 : index
    %c0_4 = arith.constant 0 : index
    %c0_5 = arith.constant 0 : index
    %4 = vector.load %arg13[%c0_3, %c0_4, %c0_5] : memref<4x8x8xbf16, #tpu.memory_space<vmem>>, vector<4x8x8xbf16>
    %c8_i32 = arith.constant 8 : i32
    %5 = arith.muli %arg1, %c8_i32 : i32
    %6 = tpu.assume_multiple %5, 8 : i32
    %c0_6 = arith.constant 0 : index
    %7 = arith.index_cast %6 : i32 to index
    %c0_7 = arith.constant 0 : index
    %8 = vector.load %arg2[%c0_6, %7, %c0_7] : memref<1x8x32xbf16, #tpu.memory_space<vmem>>, vector<1x8x32xbf16>
    %9 = vector.shape_cast %8 : vector<1x8x32xbf16> to vector<8x32xbf16>
    %c0_8 = arith.constant 0 : index
    %c0_9 = arith.constant 0 : index
    %10 = vector.load %arg3[%c0_8, %c0_9] : memref<32x32xbf16, #tpu.memory_space<vmem>>, vector<32x32xbf16>
    %cst = arith.constant dense<0.000000e+00> : vector<8x32xf32>
    %11 = tpu.matmul %9, %10, %cst {dimension_numbers = #tpu.dot_dimension_numbers<[1], [0], [0], [1], [0, 0, 1, 1], [], []>} : vector<8x32xbf16>, vector<32x32xbf16>, vector<8x32xf32> -> vector<8x32xf32>
    %c0_10 = arith.constant 0 : index
    %c0_11 = arith.constant 0 : index
    %12 = vector.load %arg4[%c0_10, %c0_11] : memref<1x32xf32, #tpu.memory_space<vmem>>, vector<1x32xf32>
    %13 = vector.broadcast %12 : vector<1x32xf32> to vector<8x32xf32>
    %14 = arith.addf %11, %13 : vector<8x32xf32>
    %15 = vector.extract_strided_slice %14 {offsets = [0, 0], sizes = [8, 8], strides = [1, 1]} : vector<8x32xf32> to vector<8x8xf32>
    %16 = vector.extract_strided_slice %14 {offsets = [0, 8], sizes = [8, 8], strides = [1, 1]} : vector<8x32xf32> to vector<8x8xf32>
    %17 = vector.extract_strided_slice %14 {offsets = [0, 16], sizes = [8, 8], strides = [1, 1]} : vector<8x32xf32> to vector<8x8xf32>
    %18 = vector.extract_strided_slice %14 {offsets = [0, 24], sizes = [8, 8], strides = [1, 1]} : vector<8x32xf32> to vector<8x8xf32>
    %19 = vector.shape_cast %15 : vector<8x8xf32> to vector<1x8x8xf32>
    %20 = vector.shape_cast %16 : vector<8x8xf32> to vector<1x8x8xf32>
    %21 = vector.shape_cast %17 : vector<8x8xf32> to vector<1x8x8xf32>
    %22 = vector.shape_cast %18 : vector<8x8xf32> to vector<1x8x8xf32>
    %23 = tpu.concatenate %19, %20, %21, %22 in 0 : vector<1x8x8xf32>, vector<1x8x8xf32>, vector<1x8x8xf32>, vector<1x8x8xf32> -> vector<4x8x8xf32>
    %24 = arith.truncf %23 : vector<4x8x8xf32> to vector<4x8x8xbf16>
    "tpu.trace_start"() <{level = 10 : i32, message = "ntd,nsd->nts"}> : () -> ()
    %cst_12 = arith.constant dense<0.000000e+00> : vector<4x8x8xf32>
    %25 = tpu.matmul %24, %3, %cst_12 {dimension_numbers = #tpu.dot_dimension_numbers<[2], [2], [1], [1], [0, 0, 0, 1, 1, 1], [0], [0]>} : vector<4x8x8xbf16>, vector<4x8x8xbf16>, vector<4x8x8xf32> -> vector<4x8x8xf32>
    "tpu.trace_stop"() : () -> ()
    %c0_13 = arith.constant 0 : index
    %c0_14 = arith.constant 0 : index
    %c0_15 = arith.constant 0 : index
    %c0_16 = arith.constant 0 : index
    %26 = vector.load %arg9[%c0_13, %c0_14, %c0_15, %c0_16] : memref<1x1x1x8xf32, #tpu.memory_space<vmem>>, vector<1x1x1x8xf32>
    %27 = vector.shape_cast %26 : vector<1x1x1x8xf32> to vector<1x1x8xf32>
    %28 = vector.broadcast %27 : vector<1x1x8xf32> to vector<4x8x8xf32>
    %29 = arith.addf %25, %28 : vector<4x8x8xf32>
    %cst_17 = arith.constant dense<0xFF800000> : vector<4x8xf32>
    %30 = vector.multi_reduction <maximumf>, %29, %cst_17 [2] : vector<4x8x8xf32> to vector<4x8xf32>
    %31 = vector.shape_cast %30 : vector<4x8xf32> to vector<4x8x1xf32>
    %32 = vector.broadcast %31 : vector<4x8x1xf32> to vector<4x8x8xf32>
    %33 = arith.subf %29, %32 : vector<4x8x8xf32>
    %34 = math.exp %33 : vector<4x8x8xf32>
    %cst_18 = arith.constant dense<0.000000e+00> : vector<4x8xf32>
    %35 = vector.multi_reduction <add>, %34, %cst_18 [2] : vector<4x8x8xf32> to vector<4x8xf32>
    %36 = vector.shape_cast %35 : vector<4x8xf32> to vector<4x8x1xf32>
    %37 = tpu.reciprocal %36 : vector<4x8x1xf32> -> vector<4x8x1xf32>
    %38 = vector.broadcast %37 : vector<4x8x1xf32> to vector<4x8x8xf32>
    %39 = arith.mulf %34, %38 : vector<4x8x8xf32>
    %c0_19 = arith.constant 0 : index
    %c0_20 = arith.constant 0 : index
    %c0_21 = arith.constant 0 : index
    %c0_22 = arith.constant 0 : index
    %40 = vector.load %arg11[%c0_19, %c0_20, %c0_21, %c0_22] : memref<1x4x8x8xf32, #tpu.memory_space<vmem>>, vector<1x4x8x8xf32>
    %41 = vector.shape_cast %40 : vector<1x4x8x8xf32> to vector<4x8x8xf32>
    %42 = vector.shape_cast %39 : vector<4x8x8xf32> to vector<1x4x8x8xf32>
    tpu.vector_store %arg11[%c0_19, %c0_20, %c0_21, %c0_22], %42 {strides = array<i32>} : memref<1x4x8x8xf32, #tpu.memory_space<vmem>>, vector<1x4x8x8xf32>,
    %43 = arith.truncf %39 : vector<4x8x8xf32> to vector<4x8x8xbf16>
    "tpu.trace_start"() <{level = 10 : i32, message = "nts,nsd->ntd"}> : () -> ()
    %cst_23 = arith.constant dense<0.000000e+00> : vector<4x8x8xf32>
    %44 = tpu.matmul %43, %4, %cst_23 {dimension_numbers = #tpu.dot_dimension_numbers<[2], [1], [1], [2], [0, 0, 0, 1, 1, 2], [0], [0]>} : vector<4x8x8xbf16>, vector<4x8x8xbf16>, vector<4x8x8xf32> -> vector<4x8x8xf32>
    "tpu.trace_stop"() : () -> ()
    %45 = vector.extract_strided_slice %44 {offsets = [0, 0, 0], sizes = [1, 8, 8], strides = [1, 1, 1]} : vector<4x8x8xf32> to vector<1x8x8xf32>
    %46 = vector.shape_cast %45 : vector<1x8x8xf32> to vector<8x8xf32>
    %47 = vector.extract_strided_slice %44 {offsets = [1, 0, 0], sizes = [1, 8, 8], strides = [1, 1, 1]} : vector<4x8x8xf32> to vector<1x8x8xf32>
    %48 = vector.shape_cast %47 : vector<1x8x8xf32> to vector<8x8xf32>
    %49 = vector.extract_strided_slice %44 {offsets = [2, 0, 0], sizes = [1, 8, 8], strides = [1, 1, 1]} : vector<4x8x8xf32> to vector<1x8x8xf32>
    %50 = vector.shape_cast %49 : vector<1x8x8xf32> to vector<8x8xf32>
    %51 = vector.extract_strided_slice %44 {offsets = [3, 0, 0], sizes = [1, 8, 8], strides = [1, 1, 1]} : vector<4x8x8xf32> to vector<1x8x8xf32>
    %52 = vector.shape_cast %51 : vector<1x8x8xf32> to vector<8x8xf32>
    %53 = tpu.concatenate %46, %48, %50, %52 in 1 : vector<8x8xf32>, vector<8x8xf32>, vector<8x8xf32>, vector<8x8xf32> -> vector<8x32xf32>
    %c0_24 = arith.constant 0 : index
    %c0_25 = arith.constant 0 : index
    %c0_26 = arith.constant 0 : index
    %54 = vector.load %arg10[%c0_24, %c0_25, %c0_26] : memref<1x8x32xf32, #tpu.memory_space<vmem>>, vector<1x8x32xf32>
    %55 = vector.shape_cast %54 : vector<1x8x32xf32> to vector<8x32xf32>
    %56 = vector.shape_cast %53 : vector<8x32xf32> to vector<1x8x32xf32>
    tpu.vector_store %arg10[%c0_24, %c0_25, %c0_26], %56 {strides = array<i32>} : memref<1x8x32xf32, #tpu.memory_space<vmem>>, vector<1x8x32xf32>,
    return
  }
  func.func @transform_0(%arg0: i32, %arg1: i32) -> (i32, i32, i32) {
    %c0_i32 = arith.constant 0 : i32
    %c0_i32_0 = arith.constant 0 : i32
    %c0_i32_1 = arith.constant 0 : i32
    return %arg0, %c0_i32, %c0_i32_0 : i32, i32, i32
  }
  func.func @transform_1(%arg0: i32, %arg1: i32) -> (i32, i32) {
    %c0_i32 = arith.constant 0 : i32
    %c0_i32_0 = arith.constant 0 : i32
    %c0_i32_1 = arith.constant 0 : i32
    return %c0_i32, %c0_i32_0 : i32, i32
  }
  func.func @transform_2(%arg0: i32, %arg1: i32) -> (i32, i32) {
    %c0_i32 = arith.constant 0 : i32
    %c0_i32_0 = arith.constant 0 : i32
    %c0_i32_1 = arith.constant 0 : i32
    return %c0_i32, %c0_i32_0 : i32, i32
  }
  func.func @transform_3(%arg0: i32, %arg1: i32) -> (i32, i32) {
    %c0_i32 = arith.constant 0 : i32
    %c0_i32_0 = arith.constant 0 : i32
    %c0_i32_1 = arith.constant 0 : i32
    return %c0_i32, %c0_i32_0 : i32, i32
  }
  func.func @transform_4(%arg0: i32, %arg1: i32) -> (i32, i32) {
    %c0_i32 = arith.constant 0 : i32
    %c0_i32_0 = arith.constant 0 : i32
    %c0_i32_1 = arith.constant 0 : i32
    return %c0_i32, %c0_i32_0 : i32, i32
  }
  func.func @transform_5(%arg0: i32, %arg1: i32) -> (i32, i32) {
    %c0_i32 = arith.constant 0 : i32
    %c0_i32_0 = arith.constant 0 : i32
    %c0_i32_1 = arith.constant 0 : i32
    return %c0_i32, %c0_i32_0 : i32, i32
  }
  func.func @transform_6(%arg0: i32, %arg1: i32) -> (i32, i32) {
    %c0_i32 = arith.constant 0 : i32
    %c0_i32_0 = arith.constant 0 : i32
    %c0_i32_1 = arith.constant 0 : i32
    return %c0_i32, %c0_i32_0 : i32, i32
  }
  func.func @transform_7(%arg0: i32, %arg1: i32) -> (i32, i32, i32, i32) {
    %c0_i32 = arith.constant 0 : i32
    %c0_i32_0 = arith.constant 0 : i32
    %c0_i32_1 = arith.constant 0 : i32
    %c0_i32_2 = arith.constant 0 : i32
    return %arg0, %c0_i32, %c0_i32_0, %c0_i32_1 : i32, i32, i32, i32
  }
  func.func @transform_8(%arg0: i32, %arg1: i32) -> (i32, i32, i32) {
    %c0_i32 = arith.constant 0 : i32
    %c0_i32_0 = arith.constant 0 : i32
    return %arg0, %arg1, %c0_i32 : i32, i32, i32
  }
  func.func @transform_9(%arg0: i32, %arg1: i32) -> (i32, i32, i32, i32) {
    %c0_i32 = arith.constant 0 : i32
    %c0_i32_0 = arith.constant 0 : i32
    %c0_i32_1 = arith.constant 0 : i32
    return %arg0, %c0_i32, %arg1, %c0_i32_0 : i32, i32, i32, i32
  }
}

</mosaic_0001>

<bundles_post_ra>
// kernel: tpu_custom_call.1
= control target key start
LH: loop header
LB: loop body
LE: loop exit
PB: predicated region body
PF: predicated region fallthrough
CT: control target
= control target key end

     0   :  { %s2245_s0 = inlined_call_operand.hbm [shape: bf16[2,8,32], index: 0, kind: input, shape index: {}]   ;;  %s2246_s1 = inlined_call_operand.hbm [shape: bf16[32,32], index: 1, kind: input, shape index: {}]   ;;  %s2247_s2 = inlined_call_operand.vmem [shape: f32[1,32], index: 2, kind: input, shape index: {}]   ;;  %s2248_s3 = inlined_call_operand.hbm [shape: bf16[32,32], index: 3, kind: input, shape index: {}]   ;;  %s2249_s4 = inlined_call_operand.vmem [shape: f32[1,32], index: 4, kind: input, shape index: {}]   ;;  %s2250_s5 = inlined_call_operand.hbm [shape: bf16[32,32], index: 5, kind: input, shape index: {}]   ;;  %s2251_s6 = inlined_call_operand.vmem [shape: f32[1,32], index: 6, kind: input, shape index: {}]   ;;  %s2252_s7 = inlined_call_operand.vmem [shape: f32[2,1,1,8], index: 7, kind: input, shape index: {}]   ;;  %s2253_s8 = inlined_call_operand.hbm [shape: f32[2,8,32], index: 8, kind: output, shape index: {0}]   ;;  %s2254_s9 = inlined_call_operand.hbm [shape: f32[2,4,8,8], index: 9, kind: output, shape index: {1}]  }
   0x1   :  { %2261 = sst [smem:[#allocation22_spill]] %s2246_s1 }
   0x2   :  { %2262 = sst [smem:[#allocation23_spill]] %s2248_s3 }
   0x3   :  { %2263 = sst [smem:[#allocation24_spill]] %s2250_s5 }
   0x4   :  { %15 = vsyncpa [#allocation5], 0 }
   0x5   :  { %17 = vsyncpa [#allocation5 + $0x1], 0 }
   0x6   :  { %18 = vsyncpa [#allocation8], 0 }
   0x7   :  { %19 = vsyncpa [#allocation11], 0 }
   0x8   :  { %20 = vsyncpa [#allocation6], 0 }
   0x9   :  { %22 = vsyncpa [#allocation6 + $0x1], 0 }
   0xa   :  { %23 = vsyncpa [#allocation14], 0 }
   0xb   :  { %25 = vsyncpa [#allocation14 + $0x1], 0  ;;  %s1904_s30 = smov 0   ;;  %s1906_s10 = smov 0  }
   0xc   :  { %s1908_s11 = smov 0   ;;  %s1910_s12 = smov 0  }
   0xd   :  { %s1912_s13 = smov 0   ;;  %s1914_s14 = smov 0  }
   0xe LB: > { %s1338_s15 = sadd.s32 4294967295, %s1835_s14   ;;  %s1339_s16 = sadd.s32 4294967294, %s1835_s14   ;;  %s1835_s14 = sphi %s1914_s14, %s31_s14   ;;  %s1831_s13 = sphi %s1912_s13, %s2288_s13   ;;  %s1827_s12 = sphi %s1910_s12, %s2287_s12   ;;  %s1823_s11 = sphi %s1908_s11, %s2286_s11   ;;  %s1819_s10 = sphi %s1906_s10, %s2285_s10   ;;  %s1815_s30 = sphi %s1904_s30, %s2284_s30  }
   0xf   : > { %p63_p0 = scmp.ne.s32.totalorder %s1819_s10, %s1815_s30  ;;  %p1938_p1 = scmp.eq.s32.totalorder %s1338_s15, 0 }
  0x10   : > { %p1942_p2 = scmp.eq.s32.totalorder %s1338_s15, 1  ;;  %p247_p3 = scmp.eq.s32.totalorder %s1339_s16, 1 }
  0x11   : > { %s2264_s17 = scalar_select %p1938_p1, 1, 0 }
  0x12   : > { %p1948_p4 = por %p1938_p1, %p63_p0  ;;  %p1340_p5 = scmp.ge.s32.totalorder %s1835_s14, 1 }
  0x13   : > { %p1953_p6 = por %p247_p3, %p63_p0  ;;  %p282_p7 = scmp.lt.s32.totalorder %s1835_s14, 3 }
  0x14   : > { %s2266_s19 = scalar_select %p1948_p4, 1, 0 }
  0x15   : > { %s2267_s20 = scalar_select %p1953_p6, 1, 0 }
  0x16   : > { %p1958_p8 = pnand %p1340_p5, %p282_p7  ;;  %s1837_s22 = smov [#allocation7]  }
  0x17   : > { %2268 = sst [smem:[#allocation20_spill]] %s2267_s20  ;;  %s294_s23 = sshll.u32 %s1837_s22, 4  ;;  %s295_s23 = int_to_ptr.vmem [resolvable:$true] %s294_s23 }
  0x18   : > { %s2269_s21 = scalar_select %p1958_p8, 1, 0 }
  0x19   : > { %p1498_p9 = pneg %p1958_p8  ;;  %s1838_s25 = smov [#allocation9]  }
  0x1a   : > { %s310_s26 = sshll.u32 %s1838_s25, 4  ;;  %s1839_s27 = smov [#allocation10]   ;;  %s311_s26 = int_to_ptr.vmem [resolvable:$true] %s310_s26 }
  0x1b   : > { %p1967_p11 = pnand %p1498_p9, %p1938_p1  ;;  %s326_s28 = sshll.u32 %s1839_s27, 4  ;;  %s327_s28 = int_to_ptr.vmem [resolvable:$true] %s326_s28 }
  0x1c   : > { %s1622_s29 = scalar_lea.vmem %s295_s23, 256  ;;  %p1630_p5 = scmp.lt.s32.totalorder %s295_s23, %s295_s23 }
  0x1d   : > { %p1613_p12 = pneg %p1967_p11  ;;  %p1623_p13 = scmp.ne.s32.totalorder %s295_s23, %s1622_s29 }
  0x1e   : > { %p1631_p7 = scmp.lt.s32.totalorder %s1622_s29, %s1622_s29 }
  0x1f   : > { %p1625_p0 = pnand %p1623_p13, %p1613_p12 }
  0x20   : > { %p1632_p9 = por %p1631_p7, %p1630_p5 }
  0x21   : > { %p1626_p3 = pneg %p1625_p0 }
  0x23   : > { %p1633_p10 = pnand %p1632_p9, %p1626_p3 }
  0x25   : > { %1636 = shalt.err (!%p1633_p10)
}
  0x26   : > { %s1840_s15 = smov 64   ;;  %s1841_s16 = smov 4  }
  0x27   : > { %s2271_s1 = sld [smem:[#allocation22_spill]]  ;;  %s1648_s27 = scalar_lea.vmem %s311_s26, 256 }
  0x28   : > { %p1649_p6 = scmp.ne.s32.totalorder %s311_s26, %s1648_s27  ;;  %p1656_p1 = scmp.lt.s32.totalorder %s311_s26, %s311_s26 }
  0x29   : > { %p1657_p4 = scmp.lt.s32.totalorder %s1648_s27, %s1648_s27 }
  0x2a   : > { %p1651_p13 = pnand %p1649_p6, %p1613_p12 }
  0x2b   : > { %p1658_p5 = por %p1657_p4, %p1656_p1 }
  0x2c   : > { %p1652_p0 = pneg %p1651_p13 }
  0x2d   : > { %1501 = dma.hbm_to_vmem [thread:$0]  (!%p1967_p11), %s2271_s1, 256, %s295_s23, [#allocation8], %s1840_s15, %s1840_s15, %s1841_s16  }
  0x2e   : > { %p1659_p3 = pnand %p1658_p5, %p1652_p0 }
  0x30   : > { %1662 = shalt.err (!%p1659_p3)
}
  0x31   : > { %s2272_s3 = sld [smem:[#allocation23_spill]]  ;;  %s1674_s23 = scalar_lea.vmem %s327_s28, 256 }
  0x32   : > { %p1675_p10 = scmp.ne.s32.totalorder %s327_s28, %s1674_s23  ;;  %p1682_p9 = scmp.lt.s32.totalorder %s327_s28, %s327_s28 }
  0x33   : > { %p1683_p13 = scmp.lt.s32.totalorder %s1674_s23, %s1674_s23 }
  0x34   : > { %p1677_p7 = pnand %p1675_p10, %p1613_p12 }
  0x35   : > { %p1684_p8 = por %p1683_p13, %p1682_p9 }
  0x36   : > { %p1678_p6 = pneg %p1677_p7 }
  0x37   : > { %1504 = dma.hbm_to_vmem [thread:$0]  (!%p1967_p11), %s2272_s3, 256, %s311_s26, [#allocation8], %s1840_s15, %s1840_s15, %s1841_s16  }
  0x38   : > { %p1685_p1 = pnand %p1684_p8, %p1678_p6 }
  0x3a   : > { %1688 = shalt.err (!%p1685_p1)
}
  0x3b   : > { %s2273_s5 = sld [smem:[#allocation24_spill]]  ;;  %s50_s20 = sadd.s32 1, %s1823_s11 }
  0x3c   : > { %s43_s26 = sadd.s32 1, %s1831_s13  ;;  %p57_p4 = scmp.ne.s32.totalorder %s1823_s11, %s1819_s10 }
  0x3d   : > { %p45_p8 = scmp.ge.s32.totalorder %s43_s26, 2  ;;  %p58_p12 = scmp.eq.s32.totalorder %s1835_s14, 0 }
  0x3e   : > { %p2004_p0 = por %p1942_p2, %p57_p4  ;;  %p1522_p5 = scmp.lt.s32.totalorder %s1835_s14, 2 }
  0x3f   : > { %s2290_s26 = smov (%p45_p8, %s43_s26), 0  ;;  %p59_p3 = por %p58_p12, %p57_p4 }
  0x40   : > { %2275 = sst [smem:[#allocation21_spill]] %s2290_s26  ;;  %s343_s27 = sand.u32 1, %s1823_s11  }
  0x41   : > { %1507 = dma.hbm_to_vmem [thread:$0]  (!%p1967_p11), %s2273_s5, 256, %s327_s28, [#allocation11], %s1840_s15, %s1840_s15, %s1841_s16  }
  0x42   : > { %s47_s29 = ssub.s32 %s1831_s13, %s2290_s26  ;;  %s1345_s28 = sshll.u32 %s343_s27, 2 }
  0x43   : > { %p48_p10 = scmp.eq.s32.totalorder %s47_s29, 0  ;;  %s1346_s15 = sshll.u32 %s1831_s13, 6 }
  0x44   : > { %s352_s18 = scalar_lea.hbm %s2245_s0, %s1346_s15  ;;  %s347_s25 = scalar_lea.vmem [#allocation4], %s1345_s28 }
  0x45   : > { %s2016_s16 = scalar_select %p48_p10, %s1823_s11, %s50_s20  }
  0x46   : > { %s354_s1 = sshll.u32 %s347_s25, 4  ;;  %p2023_p2 = pnand %p1522_p5, %p59_p3  ;;  %s355_s1 = int_to_ptr.vmem [resolvable:$true] %s354_s1 }
  0x47   : > { %s344_s5 = scalar_lea.sflag [#allocation5], %s343_s27  ;;  %s1702_s29 = scalar_lea.vmem %s355_s1, 64 }
  0x48   : > { %p1691_p11 = pneg %p2023_p2  ;;  %p1703_p7 = scmp.ne.s32.totalorder %s355_s1, %s1702_s29 }
  0x49   : > { %s1842_s20 = smov [#allocation4]  }
  0x4a   : > { %p1705_p6 = pnand %p1703_p7, %p1691_p11  ;;  %s1707_s26 = sshll.u32 %s1842_s20, 4  ;;  %s1708_s26 = int_to_ptr.vmem [resolvable:$false] %s1707_s26 }
  0x4b   : > { %s1709_s15 = scalar_lea.vmem %s1708_s26, 128  ;;  %p1710_p13 = scmp.lt.s32.totalorder %s355_s1, %s1708_s26 }
  0x4c   : > { %p1706_p9 = pneg %p1705_p6  ;;  %p1711_p1 = scmp.lt.s32.totalorder %s1709_s15, %s1702_s29 }
  0x4e   : > { %p1712_p4 = por %p1711_p1, %p1710_p13 }
  0x50   : > { %p1713_p8 = pnand %p1712_p4, %p1706_p9 }
  0x52   : > { %1716 = shalt.err (!%p1713_p8)
}
  0x53   : > { %1511 = dma.hbm_to_vmem [thread:$0]  (!%p2023_p2), %s352_s18, 64, %s355_s1, %s344_s5  }
  0x54   : > { %p2277_p12 = scmp.ne.s32.totalorder %s2269_s21, 0 }
  0x55   : > { %s2034_s27 = sand.u32 (!%p2277_p12), 1, %s1819_s10   ;;  %p2278_p5 = scmp.ne.s32.totalorder (!%p2277_p12), %s2266_s19, 0 }
  0x56   : > { %369 = sbr.rel (%p2277_p12) target bundleno = 1284 (0x504), region = 52  ;;  %s1348_s28 = sshll.u32 (!%p2277_p12), %s2034_s27, 2 }
  0x57   : > { %s372_s23 = scalar_lea.sflag (!%p2277_p12), [#allocation5], %s2034_s27  ;;  %s375_s22 = scalar_lea.vmem (!%p2277_p12), [#allocation4], %s1348_s28 }
  0x5b   : > { %1794 = dma.done.wait (%p2278_p5), %s372_s23, 64  }
  0x5c   : > { %1796 = vsyncadd (%p2278_p5), %s372_s23, 4294967232  ;;  %p2279_p3 = scmp.ne.s32.totalorder %s2264_s17, 0 }
  0x5e   : > { %1798 = dma.done.wait (%p2279_p3), [#allocation8], 512  }
  0x5f   : > { %1800 = vsyncadd (%p2279_p3), [#allocation8], 4294966784 }
  0x60   : > { %1802 = dma.done.wait (%p2279_p3), [#allocation11], 256  }
  0x61   : > { %1804 = vsyncadd (%p2279_p3), [#allocation11], 4294967040  ;;  %v1843_v0 = vmov 0.0   ;;  %vm1844_vm0 = vmmov 0   ;;  %v1589_v1 = vld [vmem:[#allocation9 + $0x8] sm:$0xff]   ;;  %v1590_v2 = vld [vmem:[#allocation9] sm:$0xff]  }
  0x62   : > { %1408 = vmatprep.subr.bf16.mxu0 %v1843_v0  ;;  %1412 = vmatprep.mubr.msk.bf16.mxu0 %vm1844_vm0, %v1843_v0  ;;  %v438_v3 = vld [vmem:[%s375_s22] sm:$0xf]  ;;  %vm462_vm1 = vcmask 261120   ;;  %v1591_v4 = vld [vmem:[#allocation7 + $0x8] sm:$0xff]   ;;  %v1592_v5 = vld [vmem:[#allocation7] sm:$0xff]   ;;  %vm597_vm2 = vcmask 60416  }
  0x63   : > { %1416 = vmatprep.subr.bf16.mxu1 %v1843_v0  ;;  %1420 = vmatprep.mubr.msk.bf16.mxu1 %vm1844_vm0, %v1843_v0  ;;  %v619_v6 = vld [vmem:[%s375_s22] sm:$0xf]  ;;  %v1593_v7 = vld [vmem:[#allocation10 + $0x8] sm:$0xff]   ;;  %v1594_v8 = vld [vmem:[#allocation10] sm:$0xff]   ;;  %s1845_s5 = smov 104   ;;  %s1846_s17 = smov 120  }
  0x64   : > { %1409 = vmatpush3.bf16.msra.mxu0 %v1589_v1  ;;  %1417 = vmatpush3.bf16.msra.mxu1 %v1593_v7  ;;  %v1354_v9 = vld [vmem:[%s2249_s4] ss:$0 sm:$0xff]  ;;  %s1847_s26 = smov 112   ;;  %vm708_vm3 = vcmask 64512   ;;  %p430_p10 = scmp.lt.s32.totalorder %s1827_s12, 1  ;;  %vm948_vm4 = vcmask 1043456  }
  0x65   : > { %1410 = vmatprep.subr.bf16.mxu0 %v1843_v0  ;;  %1418 = vmatprep.subr.bf16.mxu1 %v1843_v0  ;;  %v1362_v16 = vld [vmem:[%s2247_s2] ss:$0 sm:$0xff]  ;;  %s1353_s23 = sshll.u32 %s2034_s27, 5  ;;  %s1382_s1 = sshll.u32 %s1827_s12, 9 }
  0x66   : > { %v1358_v25 = vld [vmem:[%s2251_s6] ss:$0 sm:$0xff]  ;;  %s431_s29 = scalar_select %p430_p10, %s1827_s12, 1 }
  0x67   : > { %s2140_s22 = scalar_lea.vmem [#allocation13], %s1353_s23  ;;  %s2168_s21 = scalar_lea.hbm %s2254_s9, %s1382_s1 }
  0x68   : > { %1411 = vmatpush3.bf16.msra.mxu0 %v1590_v2  ;;  %1419 = vmatpush3.bf16.msra.mxu1 %v1594_v8  ;;  %s432_s28 = scalar_lea.vmem %s2252_s7, %s431_s29  ;;  %s1182_s3 = sshll.u32 %s2140_s22, 4  ;;  %s2170_s3 = int_to_ptr.vmem [resolvable:$true] %s1182_s3 }
  0x69   : > { %1424 = vmatprep.subr.bf16.mxu0 %v1843_v0  ;;  %1432 = vmatprep.subr.bf16.mxu1 %v1843_v0  ;;  %v1366_v52 = vld [vmem:[%s432_s28] ss:$0 sm:$0xff]  ;;  %s1717_s18 = scalar_lea.vmem %s2170_s3, 512  ;;  %s1849_s25 = smov [#allocation13]  }
  0x6a   : > { %p1718_p2 = scmp.ne.s32.totalorder %s2170_s3, %s1717_s18  ;;  %s1721_s29 = sshll.u32 %s1849_s25, 4  ;;  %s1722_s29 = int_to_ptr.vmem [resolvable:$false] %s1721_s29 }
  0x6b   : > { %1413 = vmatmul.mubr.msk.bf16.vlgmr.msra.gmra.mxu0 %vm462_vm1, %v438_v3  ;;  %1421 = vmatmul.mubr.msk.bf16.vlgmr.msra.gmra.mxu1 %vm462_vm1, %v438_v3  ;;  %s1723_s20 = scalar_lea.vmem %s1722_s29, 1024  ;;  %p1724_p6 = scmp.lt.s32.totalorder %s2170_s3, %s1722_s29 }
  0x6c   : > { %1425 = vmatpush3.bf16.msra.mxu0 %v1591_v4  ;;  %1428 = vmatprep.mubr.msk.bf16.mxu0 %vm1844_vm0, %v1843_v0  ;;  %p1719_p11 = pnand %p1718_p2, %p2004_p0  ;;  %p1725_p9 = scmp.lt.s32.totalorder %s1723_s20, %s1717_s18 }
  0x6d   : > { %1426 = vmatprep.subr.bf16.mxu0 %v1843_v0  ;;  %1434 = vmatprep.mubr.msk.bf16.mxu1 %vm1844_vm0, %v1843_v0 }
  0x6e   : > { %p1720_p7 = pneg %p1719_p11  ;;  %p1726_p13 = por %p1725_p9, %p1724_p6 }
  0x70   : > { %1427 = vmatpush3.bf16.msra.mxu0 %v1592_v5  ;;  %p1727_p1 = pnand %p1726_p13, %p1720_p7 }
  0x71   : > { %1438 = vmatprep.subr.bf16.mxu0 %v1843_v0 }
  0x73   : > { %1429 = vmatmul.mubr.msk.bf16.vlgmr.msra.gmra.mxu0 %vm462_vm1, %v619_v6 }
  0x74   : > { %1440 = vmatprep.mubr.msk.bf16.mxu0 %vm1844_vm0, %v1843_v0 }
 0x12b   : > { %v500_v10 = vpop.f32.mrf.mxu0  ;;  %v563_v26 = vpop.f32.mrf.mxu1 }
 0x12c   : > { %v501_v11 = vadd.f32 %v1354_v9, %v500_v10  ;;  %v2092_v27 = vadd.f32 %v1358_v25, %v563_v26 }
 0x12d   : > { %v1414_v12 = vpop.f32.mrf.mxu0  ;;  %v1422_v28 = vpop.f32.mrf.mxu1 }
 0x12e   : > { %v579_v13 = vpack.c.bf16 %v501_v11, %v501_v11  ;;  %576 = vrot.lane.b32.xlu1 %v501_v11, %s1845_s5  ;;  %570 = vrot.lane.b32.xlu0 %v501_v11, %s1846_s17  ;;  %v593_v29 = vpack.c.bf16 %v2092_v27, %v2092_v27 }
 0x12f   : > { %v503_v14 = vpop.f32.mrf.mxu0  ;;  %v566_v30 = vpop.f32.mrf.mxu1 }
 0x130   : > { %598 = vst.msk [vmem:[#allocation2] sm:$0xf] %vm597_vm2, %v579_v13  ;;  %602 = vst.msk [vmem:[#allocation3] sm:$0xf] %vm597_vm2, %v593_v29 }
 0x131   : > { %v1415_v15 = vpop.f32.mrf.mxu0  ;;  %v1423_v31 = vpop.f32.mrf.mxu1 }
 0x132   : > { %573 = vrot.lane.b32.xlu0 %v501_v11, %s1847_s26 }
 0x133   : > { %v681_v17 = vpop.f32.mrf.mxu0 }
 0x134   : > { %v682_v18 = vadd.f32 %v1362_v16, %v681_v17 }
 0x135   : > { %v1430_v19 = vpop.f32.mrf.mxu0 }
 0x136   : > { %688 = vrot.lane.b32.xlu1 %v682_v18, %s1846_s17  ;;  %691 = vrot.lane.b32.xlu0 %v682_v18, %s1847_s26  ;;  %v697_v24 = vpack.c.bf16 %v682_v18, %v682_v18 }
 0x137   : > { %v684_v20 = vpop.f32.mrf.mxu0  ;;  %v606_v21 = vld [vmem:[#allocation2] sm:$0xf]  ;;  %v610_v50 = vld [vmem:[#allocation3] sm:$0xf] }
 0x138   : > { %v713_v22 = vsel %vm708_vm3, %v606_v21, 0  ;;  %v950_v51 = vsel %vm948_vm4, %v610_v50, 0 }
 0x139   : > { %1433 = vmatpush3.bf16.xpose.msra.mxu1 %v713_v22  ;;  %v1431_v23 = vpop.f32.mrf.mxu0 }
 0x13a   : > { %694 = vrot.lane.b32.xlu1 %v682_v18, %s1845_s5  ;;  %1444 = vmatprep.subr.bf16.mxu1 %v1843_v0 }
 0x140   : > { %1435 = vmatmul.mubr.msk.bf16.vlgmr.msra.gmra.mxu1 %vm708_vm3, %v697_v24 }
 0x141   : > { %1446 = vmatprep.mubr.msk.bf16.mxu1 %vm1844_vm0, %v1843_v0 }
 0x1a0   : > { %v577_v32 = vpop.permute.xlu1 %576  ;;  %v571_v33 = vpop.permute.xlu0 %570 }
 0x1a1   : > { %v582_v34 = vpack.c.bf16 %v577_v32, %v577_v32  ;;  %v580_v35 = vpack.c.bf16 %v571_v33, %v571_v33 }
 0x1a3   : > { %601 = vst.msk [vmem:[#allocation2 + $0xc] sm:$0xf] %vm597_vm2, %v582_v34  ;;  %599 = vst.msk [vmem:[#allocation2 + $0x4] sm:$0xf] %vm597_vm2, %v580_v35 }
 0x1a4   : > { %v574_v36 = vpop.permute.xlu0 %573 }
 0x1a5   : > { %v581_v37 = vpack.c.bf16 %v574_v36, %v574_v36 }
 0x1a7   : > { %600 = vst.msk [vmem:[#allocation2 + $0x8] sm:$0xf] %vm597_vm2, %v581_v37 }
 0x1a8   : > { %v689_v40 = vpop.permute.xlu1 %688  ;;  %v692_v45 = vpop.permute.xlu0 %691 }
 0x1a9   : > { %v698_v42 = vpack.c.bf16 %v689_v40, %v689_v40  ;;  %v699_v47 = vpack.c.bf16 %v692_v45, %v692_v45 }
 0x1aa   : > { %v607_v38 = vld [vmem:[#allocation2 + $0x4] sm:$0xf]  ;;  %v609_v44 = vld [vmem:[#allocation2 + $0xc] sm:$0xf] }
 0x1ab   : > { %v759_v39 = vsel %vm708_vm3, %v607_v38, 0  ;;  %v851_v46 = vsel %vm708_vm3, %v609_v44, 0 }
 0x1ac   : > { %1439 = vmatpush3.bf16.xpose.msra.mxu0 %v759_v39  ;;  %v695_v48 = vpop.permute.xlu1 %694 }
 0x1ad   : > { %1450 = vmatprep.subr.bf16.mxu0 %v1843_v0  ;;  %v700_v49 = vpack.c.bf16 %v695_v48, %v695_v48 }
 0x1ae   : > { %v608_v41 = vld [vmem:[#allocation2 + $0x8] sm:$0xf] }
 0x1af   : > { %v805_v43 = vsel %vm708_vm3, %v608_v41, 0 }
 0x1b0   : > { %1445 = vmatpush3.bf16.xpose.msra.mxu1 %v805_v43 }
 0x1b1   : > { %1456 = vmatprep.subr.bf16.mxu1 %v1843_v0 }
 0x1b3   : > { %1441 = vmatmul.mubr.msk.bf16.vlgmr.msra.gmra.mxu0 %vm708_vm3, %v698_v42 }
 0x1b4   : > { %1451 = vmatpush3.bf16.xpose.msra.mxu0 %v851_v46  ;;  %1452 = vmatprep.mubr.msk.bf16.mxu0 %vm1844_vm0, %v1843_v0 }
 0x1b5   : > { %1462 = vmatprep.subr.bf16.mxu0 %v1843_v0 }
 0x1b7   : > { %1447 = vmatmul.mubr.msk.bf16.vlgmr.msra.gmra.mxu1 %vm708_vm3, %v699_v47 }
 0x1b8   : > { %1458 = vmatprep.mubr.msk.bf16.mxu1 %vm1844_vm0, %v1843_v0  ;;  %1457 = vmatpush3.bf16.msra.mxu1 %v950_v51 }
 0x1b9   : > { %1468 = vmatprep.subr.bf16.mxu1 %v1843_v0 }
 0x1bb   : > { %1453 = vmatmul.mubr.msk.bf16.vlgmr.msra.gmra.mxu0 %vm708_vm3, %v700_v49 }
 0x1bc   : > { %1464 = vmatprep.mubr.msk.bf16.mxu0 %vm1844_vm0, %v1843_v0 }
 0x200   : > { %v749_v53 = vpop.f32.mrf.mxu1 }
 0x201   : > { %v750_v54 = vadd.f32 %v1366_v52, %v749_v53 }
 0x202   : > { %v1436_v55 = vpop.f32.mrf.mxu1 }
 0x203   : > { %v893_v56 = vsel %vm708_vm3, %v750_v54, -inf }
 0x204   : > { %894 = vmax.xlane.f32.xlu0 %v893_v56  ;;  %v752_v57 = vpop.f32.mrf.mxu1 }
 0x206   : > { %v1437_v58 = vpop.f32.mrf.mxu1 }
 0x273   : > { %v795_v59 = vpop.f32.mrf.mxu0 }
 0x274   : > { %v796_v60 = vadd.f32 %v1366_v52, %v795_v59 }
 0x275   : > { %v1442_v61 = vpop.f32.mrf.mxu0 }
 0x276   : > { %v896_v62 = vsel %vm708_vm3, %v796_v60, -inf }
 0x277   : > { %v841_v63 = vpop.f32.mrf.mxu1  ;;  %897 = vmax.xlane.f32.xlu1 %v896_v62  ;;  %v798_v1 = vpop.f32.mrf.mxu0 }
 0x278   : > { %v842_v2 = vadd.f32 %v1366_v52, %v841_v63 }
 0x279   : > { %v1443_v3 = vpop.f32.mrf.mxu0  ;;  %v1448_v4 = vpop.f32.mrf.mxu1 }
 0x27a   : > { %v899_v5 = vsel %vm708_vm3, %v842_v2, -inf }
 0x27b   : > { %900 = vmax.xlane.f32.xlu0 %v899_v5  ;;  %v844_v6 = vpop.f32.mrf.mxu1  ;;  %v887_v7 = vpop.f32.mrf.mxu0 }
 0x27c   : > { %v888_v8 = vadd.f32 %v1366_v52, %v887_v7 }
 0x27d   : > { %v1449_v9 = vpop.f32.mrf.mxu1  ;;  %v1454_v10 = vpop.f32.mrf.mxu0 }
 0x27e   : > { %v902_v11 = vsel %vm708_vm3, %v888_v8, -inf }
 0x27f   : > { %903 = vmax.xlane.f32.xlu0 %v902_v11  ;;  %v890_v12 = vpop.f32.mrf.mxu0 }
 0x281   : > { %v1455_v13 = vpop.f32.mrf.mxu0 }
 0x288   : > { %584 = vrot.lane.b32.xlu1 %v2092_v27, %s1846_s17 }
 0x28d   : > { %v895_v14 = vpop.xlane.xlu0 %894 }
 0x28e   : > { %v905_v15 = vsub.f32 %v750_v54, %v895_v14 }
 0x290   : > { %v909_v16 = vmul.f32 1.442695, %v905_v15 }
 0x292   : > { %1595 = vpow2.f32 %v909_v16 }
 0x29f   : > { %v1596_v17 = vpop.eup %1595 }
 0x2a0   : > { %v917_v18 = vsel %vm708_vm3, %v1596_v17, 0.0 }
 0x2ac   : > { %918 = vadd.xlane.f32.xlu1 %v917_v18 }
 0x300   : > { %v898_v19 = vpop.xlane.xlu1 %897 }
 0x301   : > { %v906_v20 = vsub.f32 %v796_v60, %v898_v19 }
 0x303   : > { %v911_v21 = vmul.f32 1.442695, %v906_v20 }
 0x304   : > { %v901_v22 = vpop.xlane.xlu0 %900  ;;  %v585_v23 = vpop.permute.xlu1 %584 }
 0x305   : > { %1597 = vpow2.f32 %v911_v21  ;;  %v907_v24 = vsub.f32 %v842_v2, %v901_v22  ;;  %v594_v25 = vpack.c.bf16 %v585_v23, %v585_v23 }
 0x307   : > { %v913_v26 = vmul.f32 1.442695, %v907_v24  ;;  %603 = vst.msk [vmem:[#allocation3 + $0x4] sm:$0xf] %vm597_vm2, %v594_v25 }
 0x308   : > { %v904_v28 = vpop.xlane.xlu0 %903 }
 0x309   : > { %1599 = vpow2.f32 %v913_v26  ;;  %v908_v29 = vsub.f32 %v888_v8, %v904_v28 }
 0x30b   : > { %v915_v30 = vmul.f32 1.442695, %v908_v29 }
 0x30d   : > { %1601 = vpow2.f32 %v915_v30 }
 0x30e   : > { %v611_v31 = vld [vmem:[#allocation3 + $0x4] sm:$0xf] }
 0x30f   : > { %v996_v32 = vsel %vm948_vm4, %v611_v31, 0 }
 0x310   : > { %1463 = vmatpush3.bf16.msra.mxu0 %v996_v32 }
 0x311   : > { %1474 = vmatprep.subr.bf16.mxu0 %v1843_v0 }
 0x312   : > { %v1598_v33 = vpop.eup %1597 }
 0x313   : > { %v920_v34 = vsel %vm708_vm3, %v1598_v33, 0.0 }
 0x314   : > { %921 = vadd.xlane.f32.xlu0 %v920_v34 }
 0x316   : > { %v1600_v35 = vpop.eup %1599 }
 0x317   : > { %v923_v36 = vsel %vm708_vm3, %v1600_v35, 0.0 }
 0x318   : > { %924 = vadd.xlane.f32.xlu1 %v923_v36 }
 0x31a   : > { %v1602_v37 = vpop.eup %1601 }
 0x31b   : > { %v926_v38 = vsel %vm708_vm3, %v1602_v37, 0.0 }
 0x31c   : > { %927 = vadd.xlane.f32.xlu0 %v926_v38 }
 0x329   : > { %590 = vrot.lane.b32.xlu1 %v2092_v27, %s1845_s5  ;;  %s1848_s5 = smov 8  }
 0x332   : > { %587 = vrot.lane.b32.xlu0 %v2092_v27, %s1847_s26  ;;  %s1154_s26 = scalar_lea.sflag [#allocation14], %s2034_s27 }
 0x335   : > { %v919_v39 = vpop.xlane.xlu1 %918 }
 0x336   : > { %1603 = vrcp.f32 %v919_v39 }
 0x343   : > { %v1604_v40 = vpop.eup %1603 }
 0x344   : > { %v933_v41 = vmul.f32 %v1604_v40, %v1596_v17 }
 0x346   : > { %937 = vst.msk [vmem:[%s2140_s22] sm:$0xff] %vm708_vm3, %v933_v41  ;;  %v941_v42 = vpack.c.bf16 %v933_v41, %v933_v41 }
 0x348   : > { %1459 = vmatmul.mubr.msk.bf16.vlgmr.msra.gmra.mxu1 %vm708_vm3, %v941_v42 }
 0x349   : > { %1470 = vmatprep.mubr.msk.bf16.mxu1 %vm1844_vm0, %v1843_v0 }
 0x39d   : > { %v922_v43 = vpop.xlane.xlu0 %921 }
 0x39e   : > { %1605 = vrcp.f32 %v922_v43 }
 0x3a1   : > { %v925_v27 = vpop.xlane.xlu1 %924 }
 0x3a2   : > { %1607 = vrcp.f32 %v925_v27 }
 0x3a5   : > { %v591_v44 = vpop.permute.xlu1 %590  ;;  %v928_v45 = vpop.xlane.xlu0 %927 }
 0x3a6   : > { %v596_v46 = vpack.c.bf16 %v591_v44, %v591_v44  ;;  %1609 = vrcp.f32 %v928_v45 }
 0x3a8   : > { %605 = vst.msk [vmem:[#allocation3 + $0xc] sm:$0xf] %vm597_vm2, %v596_v46 }
 0x3a9   : > { %v588_v47 = vpop.permute.xlu0 %587 }
 0x3aa   : > { %v595_v48 = vpack.c.bf16 %v588_v47, %v588_v47 }
 0x3ab   : > { %v1606_v49 = vpop.eup %1605 }
 0x3ac   : > { %604 = vst.msk [vmem:[#allocation3 + $0x8] sm:$0xf] %vm597_vm2, %v595_v48  ;;  %v934_v50 = vmul.f32 %v1606_v49, %v1598_v33 }
 0x3ae   : > { %938 = vst.msk [vmem:[%s2140_s22 + $0x8] sm:$0xff] %vm708_vm3, %v934_v50  ;;  %v942_v51 = vpack.c.bf16 %v934_v50, %v934_v50 }
 0x3af   : > { %v1608_v52 = vpop.eup %1607  ;;  %v613_v53 = vld [vmem:[#allocation3 + $0xc] sm:$0xf] }
 0x3b0   : > { %1465 = vmatmul.mubr.msk.bf16.vlgmr.msra.gmra.mxu0 %vm708_vm3, %v942_v51  ;;  %v1088_v54 = vsel %vm948_vm4, %v613_v53, 0  ;;  %v935_v55 = vmul.f32 %v1608_v52, %v1600_v35 }
 0x3b1   : > { %1475 = vmatpush3.bf16.msra.mxu0 %v1088_v54  ;;  %1476 = vmatprep.mubr.msk.bf16.mxu0 %vm1844_vm0, %v1843_v0 }
 0x3b2   : > { %939 = vst.msk [vmem:[%s2140_s22 + $0x10] sm:$0xff] %vm708_vm3, %v935_v55  ;;  %v943_v60 = vpack.c.bf16 %v935_v55, %v935_v55 }
 0x3b3   : > { %v1610_v56 = vpop.eup %1609  ;;  %v612_v57 = vld [vmem:[#allocation3 + $0x8] sm:$0xf] }
 0x3b4   : > { %v1042_v58 = vsel %vm948_vm4, %v612_v57, 0  ;;  %v936_v59 = vmul.f32 %v1610_v56, %v1602_v37 }
 0x3b5   : > { %1469 = vmatpush3.bf16.msra.mxu1 %v1042_v58 }
 0x3b6   : > { %940 = vst.msk [vmem:[%s2140_s22 + $0x18] sm:$0xff] %vm708_vm3, %v936_v59  ;;  %v944_v61 = vpack.c.bf16 %v936_v59, %v936_v59 }
 0x3b8   : > { %1471 = vmatmul.mubr.msk.bf16.vlgmr.msra.gmra.mxu1 %vm708_vm3, %v943_v60  ;;  %1477 = vmatmul.mubr.msk.bf16.vlgmr.msra.gmra.mxu0 %vm708_vm3, %v944_v61 }
 0x408   : > { %v986_v0 = vpop.f32.mrf.mxu1 }
 0x40a   : > { %v1460_v62 = vpop.f32.mrf.mxu1 }
 0x40c   : > { %v989_v63 = vpop.f32.mrf.mxu1 }
 0x40e   : > { %v1461_v1 = vpop.f32.mrf.mxu1 }
 0x470   : > { %v1032_v2 = vpop.f32.mrf.mxu0 }
 0x471   : > { %1131 = vrot.lane.b32.xlu1 %v1032_v2, %s1848_s5 }
 0x472   : > { %v1466_v3 = vpop.f32.mrf.mxu0 }
 0x473   : > { %1730 = shalt.err (!%p1727_p1)
}
 0x474   : > { %s1731_s15 = scalar_lea.hbm %s2168_s21, 512  ;;  %s1735_s22 = scalar_lea.hbm %s2254_s9, 1024 }
 0x475   : > { %p1732_p4 = scmp.ne.s32.totalorder %s2168_s21, %s1731_s15  ;;  %p1736_p5 = scmp.lt.s32.totalorder %s2168_s21, %s2254_s9 }
 0x476   : > { %p1737_p3 = scmp.lt.s32.totalorder %s1735_s22, %s1731_s15 }
 0x477   : > { %p1733_p8 = pnand %p1732_p4, %p2004_p0 }
 0x478   : > { %p1738_p10 = por %p1737_p3, %p1736_p5 }
 0x479   : > { %p1734_p12 = pneg %p1733_p8 }
 0x47b   : > { %p1739_p2 = pnand %p1738_p10, %p1734_p12 }
 0x47d   : > { %1742 = shalt.err (!%p1739_p2)
}
 0x47e   : > { %s1850_s19 = smov 128   ;;  %v1035_v4 = vpop.f32.mrf.mxu0  ;;  %v1078_v6 = vpop.f32.mrf.mxu1  ;;  %s1851_s18 = smov 16   ;;  %vm1143_vm5 = vcmask 130048   ;;  %vm1145_vm6 = vcmask 195584  }
 0x47f   : > { %1495 = dma.vmem_to_hbm [thread:$0]  (%p2004_p0), %s2170_s3, 512, %s2168_s21, %s1154_s26, %s1850_s19, %s1850_s19, %s1848_s5  }
 0x480   : > { %v1467_v5 = vpop.f32.mrf.mxu0  ;;  %1135 = vrot.lane.b32.xlu0 %v1078_v6, %s1851_s18  ;;  %s1852_s25 = smov 24   ;;  %v1472_v8 = vpop.f32.mrf.mxu1  ;;  %s1352_s29 = sshll.u32 %s2034_s27, 3 }
 0x481   : > { %s1377_s3 = sshll.u32 %s1827_s12, 7  ;;  %s422_s5 = scalar_lea.vmem [#allocation12], %s1352_s29 }
 0x482   : > { %v1124_v7 = vpop.f32.mrf.mxu0  ;;  %v1081_v10 = vpop.f32.mrf.mxu1  ;;  %s1168_s21 = sshll.u32 %s422_s5, 4  ;;  %s2202_s15 = scalar_lea.hbm %s2253_s8, %s1377_s3  ;;  %s1169_s21 = int_to_ptr.vmem [resolvable:$true] %s1168_s21 }
 0x483   : > { %1139 = vrot.lane.b32.xlu1 %v1124_v7, %s1852_s25  ;;  %s1149_s28 = scalar_lea.sflag [#allocation6], %s2034_s27  ;;  %s1743_s23 = scalar_lea.vmem %s1169_s21, 128 }
 0x484   : > { %v1478_v9 = vpop.f32.mrf.mxu0  ;;  %v1473_v12 = vpop.f32.mrf.mxu1  ;;  %p1744_p11 = scmp.ne.s32.totalorder %s1169_s21, %s1743_s23  ;;  %s1853_s12 = smov [#allocation12]  }
 0x485   : > { %s1747_s22 = sshll.u32 %s1853_s12, 4  ;;  %s1748_s22 = int_to_ptr.vmem [resolvable:$false] %s1747_s22 }
 0x486   : > { %v1127_v11 = vpop.f32.mrf.mxu0  ;;  %p1745_p7 = pnand %p1744_p11, %p2004_p0  ;;  %s1749_s1 = scalar_lea.vmem %s1748_s22, 256 }
 0x487   : > { %p1750_p9 = scmp.lt.s32.totalorder %s1169_s21, %s1748_s22  ;;  %p1751_p13 = scmp.lt.s32.totalorder %s1749_s1, %s1743_s23 }
 0x488   : > { %v1479_v13 = vpop.f32.mrf.mxu0  ;;  %p1746_p6 = pneg %p1745_p7 }
 0x489   : > { %p1752_p1 = por %p1751_p13, %p1750_p9 }
 0x48b   : > { %p1753_p4 = pnand %p1752_p1, %p1746_p6 }
 0x4e3   : > { %v1132_v14 = vpop.permute.xlu1 %1131 }
 0x4e4   : > { %v1142_v15 = vsel %vm708_vm3, %v986_v0, %v1132_v14 }
 0x4f2   : > { %v1136_v16 = vpop.permute.xlu0 %1135 }
 0x4f3   : > { %v1144_v18 = vsel %vm1143_vm5, %v1142_v15, %v1136_v16 }
 0x4f5   : > { %v1140_v17 = vpop.permute.xlu1 %1139 }
 0x4f6   : > { %v1146_v19 = vsel %vm1145_vm6, %v1144_v18, %v1140_v17 }
 0x4f7   : > { %1147 = vst.msk [vmem:[%s422_s5] sm:$0xff] %vm462_vm1, %v1146_v19 }
 0x4f8   : > { %1756 = shalt.err (!%p1753_p4)
}
 0x4f9   : > { %s1757_s17 = scalar_lea.hbm %s2202_s15, 128  ;;  %s1761_s18 = scalar_lea.hbm %s2253_s8, 256 }
 0x4fa   : > { %p1758_p8 = scmp.ne.s32.totalorder %s2202_s15, %s1757_s17  ;;  %p1762_p3 = scmp.lt.s32.totalorder %s2202_s15, %s2253_s8 }
 0x4fb   : > { %p1763_p10 = scmp.lt.s32.totalorder %s1761_s18, %s1757_s17 }
 0x4fc   : > { %p1759_p12 = pnand %p1758_p8, %p2004_p0 }
 0x4fd   : > { %p1764_p2 = por %p1763_p10, %p1762_p3 }
 0x4fe   : > { %p1760_p5 = pneg %p1759_p12 }
 0x500   : > { %p1765_p11 = pnand %p1764_p2, %p1760_p5 }
 0x502   : > { %1768 = shalt.err (!%p1765_p11)
}
 0x503   : > { %1494 = dma.vmem_to_hbm [thread:$0]  (%p2004_p0), %s1169_s21, 128, %s2202_s15, %s1149_s28  }
 0x504 PF: > { %s2280_s3 = sld [smem:[#allocation20_spill]]  ;;  %s1197_s5 = sand.u32 1, %s1815_s30  }
 0x505   : > { %p2282_p6 = scmp.ge.s32.totalorder %s1835_s14, 2  ;;  %s1198_s26 = scalar_lea.sflag [#allocation6], %s1197_s5 }
 0x50a   : > { %p2281_p7 = scmp.ne.s32.totalorder %s2280_s3, 0 }
 0x50c   : > { %p1513_p9 = pnand %p2282_p6, %p2281_p7 }
 0x50e   : > { %p1514_p13 = pneg %p1513_p9 }
 0x510   : > { %1806 = dma.done.wait (%p1514_p13), %s1198_s26, 128  }
 0x511   : > { %1808 = vsyncadd (%p1514_p13), %s1198_s26, 4294967168  ;;  %s1207_s20 = scalar_lea.sflag [#allocation14], %s1197_s5 }
 0x512   : > { %1810 = dma.done.wait (%p1514_p13), %s1207_s20, 512  }
 0x513   : > { %1812 = vsyncadd (%p1514_p13), %s1207_s20, 4294966784  ;;  %s31_s14 = sadd.s32 1, %s1835_s14   ;;  %s2283_s24 = sld [smem:[#allocation21_spill]] }
 0x514   : > { %p28_p1 = scmp.ge.s32.totalorder %s31_s14, 4   ;;  %s2284_s30 = smov %s1819_s10 }
 0x515   : > { %s2285_s10 = smov %s1823_s11  ;;  %s2286_s11 = smov %s2016_s16 }
 0x516   : > { %s2287_s12 = smov %s1831_s13  ;;  %30 = sbr.rel (!%p28_p1) target bundleno = 14 (0xe), region = 134 }
 0x519   : > { %s2288_s13 = smov %s2283_s24 }
 0x51b   :  { %1212 = vsyncpa [#allocation5], 1 }
 0x51c   :  { %1214 = vsyncpa [#allocation5 + $0x1], 1 }
 0x51d   :  { %1215 = vsyncpa [#allocation8], 1 }
 0x51e   :  { %1216 = vsyncpa [#allocation11], 1 }
 0x51f   :  { %1217 = vsyncpa [#allocation6], 1 }
 0x520   :  { %1219 = vsyncpa [#allocation6 + $0x1], 1 }
 0x521   :  { %1220 = vsyncpa [#allocation14], 1 }
 0x522   :  { %1222 = vsyncpa [#allocation14 + $0x1], 1 }

// kernel: tpu_custom_call.1
= control target key start
LH: loop header
LB: loop body
LE: loop exit
PB: predicated region body
PF: predicated region fallthrough
CT: control target
= control target key end

     0   :  { %s2245_s0 = inlined_call_operand.hbm [shape: bf16[2,8,32], index: 0, kind: input, shape index: {}]   ;;  %s2246_s1 = inlined_call_operand.hbm [shape: bf16[32,32], index: 1, kind: input, shape index: {}]   ;;  %s2247_s2 = inlined_call_operand.vmem [shape: f32[1,32], index: 2, kind: input, shape index: {}]   ;;  %s2248_s3 = inlined_call_operand.hbm [shape: bf16[32,32], index: 3, kind: input, shape index: {}]   ;;  %s2249_s4 = inlined_call_operand.vmem [shape: f32[1,32], index: 4, kind: input, shape index: {}]   ;;  %s2250_s5 = inlined_call_operand.hbm [shape: bf16[32,32], index: 5, kind: input, shape index: {}]   ;;  %s2251_s6 = inlined_call_operand.vmem [shape: f32[1,32], index: 6, kind: input, shape index: {}]   ;;  %s2252_s7 = inlined_call_operand.vmem [shape: f32[2,1,1,8], index: 7, kind: input, shape index: {}]   ;;  %s2253_s8 = inlined_call_operand.hbm [shape: f32[2,8,32], index: 8, kind: output, shape index: {0}]   ;;  %s2254_s9 = inlined_call_operand.hbm [shape: f32[2,4,8,8], index: 9, kind: output, shape index: {1}]  }
   0x1   :  { %2261 = sst [smem:[#allocation22_spill]] %s2246_s1 }
   0x2   :  { %2262 = sst [smem:[#allocation23_spill]] %s2248_s3 }
   0x3   :  { %2263 = sst [smem:[#allocation24_spill]] %s2250_s5 }
   0x4   :  { %15 = vsyncpa [#allocation5], 0 }
   0x5   :  { %17 = vsyncpa [#allocation5 + $0x1], 0 }
   0x6   :  { %18 = vsyncpa [#allocation8], 0 }
   0x7   :  { %19 = vsyncpa [#allocation11], 0 }
   0x8   :  { %20 = vsyncpa [#allocation6], 0 }
   0x9   :  { %22 = vsyncpa [#allocation6 + $0x1], 0 }
   0xa   :  { %23 = vsyncpa [#allocation14], 0 }
   0xb   :  { %25 = vsyncpa [#allocation14 + $0x1], 0  ;;  %s1904_s30 = smov 0   ;;  %s1906_s10 = smov 0  }
   0xc   :  { %s1908_s11 = smov 0   ;;  %s1910_s12 = smov 0  }
   0xd   :  { %s1912_s13 = smov 0   ;;  %s1914_s14 = smov 0  }
   0xe LB: > { %s1338_s15 = sadd.s32 4294967295, %s1835_s14   ;;  %s1339_s16 = sadd.s32 4294967294, %s1835_s14   ;;  %s1835_s14 = sphi %s1914_s14, %s31_s14   ;;  %s1831_s13 = sphi %s1912_s13, %s2288_s13   ;;  %s1827_s12 = sphi %s1910_s12, %s2287_s12   ;;  %s1823_s11 = sphi %s1908_s11, %s2286_s11   ;;  %s1819_s10 = sphi %s1906_s10, %s2285_s10   ;;  %s1815_s30 = sphi %s1904_s30, %s2284_s30  }
   0xf   : > { %p63_p0 = scmp.ne.s32.totalorder %s1819_s10, %s1815_s30  ;;  %p1938_p1 = scmp.eq.s32.totalorder %s1338_s15, 0 }
  0x10   : > { %p1942_p2 = scmp.eq.s32.totalorder %s1338_s15, 1  ;;  %p247_p3 = scmp.eq.s32.totalorder %s1339_s16, 1 }
  0x11   : > { %s2264_s17 = scalar_select %p1938_p1, 1, 0 }
  0x12   : > { %p1948_p4 = por %p1938_p1, %p63_p0  ;;  %p1340_p5 = scmp.ge.s32.totalorder %s1835_s14, 1 }
  0x13   : > { %p1953_p6 = por %p247_p3, %p63_p0  ;;  %p282_p7 = scmp.lt.s32.totalorder %s1835_s14, 3 }
  0x14   : > { %s2266_s19 = scalar_select %p1948_p4, 1, 0 }
  0x15   : > { %s2267_s20 = scalar_select %p1953_p6, 1, 0 }
  0x16   : > { %p1958_p8 = pnand %p1340_p5, %p282_p7  ;;  %s1837_s22 = smov [#allocation7]  }
  0x17   : > { %2268 = sst [smem:[#allocation20_spill]] %s2267_s20  ;;  %s294_s23 = sshll.u32 %s1837_s22, 4  ;;  %s295_s23 = int_to_ptr.vmem [resolvable:$true] %s294_s23 }
  0x18   : > { %s2269_s21 = scalar_select %p1958_p8, 1, 0 }
  0x19   : > { %p1498_p9 = pneg %p1958_p8  ;;  %s1838_s25 = smov [#allocation9]  }
  0x1a   : > { %s310_s26 = sshll.u32 %s1838_s25, 4  ;;  %s1839_s27 = smov [#allocation10]   ;;  %s311_s26 = int_to_ptr.vmem [resolvable:$true] %s310_s26 }
  0x1b   : > { %p1967_p11 = pnand %p1498_p9, %p1938_p1  ;;  %s326_s28 = sshll.u32 %s1839_s27, 4  ;;  %s327_s28 = int_to_ptr.vmem [resolvable:$true] %s326_s28 }
  0x1c   : > { %s1622_s29 = scalar_lea.vmem %s295_s23, 256  ;;  %p1630_p5 = scmp.lt.s32.totalorder %s295_s23, %s295_s23 }
  0x1d   : > { %p1613_p12 = pneg %p1967_p11  ;;  %p1623_p13 = scmp.ne.s32.totalorder %s295_s23, %s1622_s29 }
  0x1e   : > { %p1631_p7 = scmp.lt.s32.totalorder %s1622_s29, %s1622_s29 }
  0x1f   : > { %p1625_p0 = pnand %p1623_p13, %p1613_p12 }
  0x20   : > { %p1632_p9 = por %p1631_p7, %p1630_p5 }
  0x21   : > { %p1626_p3 = pneg %p1625_p0 }
  0x23   : > { %p1633_p10 = pnand %p1632_p9, %p1626_p3 }
  0x25   : > { %1636 = shalt.err (!%p1633_p10)
}
  0x26   : > { %s1840_s15 = smov 64   ;;  %s1841_s16 = smov 4  }
  0x27   : > { %s2271_s1 = sld [smem:[#allocation22_spill]]  ;;  %s1648_s27 = scalar_lea.vmem %s311_s26, 256 }
  0x28   : > { %p1649_p6 = scmp.ne.s32.totalorder %s311_s26, %s1648_s27  ;;  %p1656_p1 = scmp.lt.s32.totalorder %s311_s26, %s311_s26 }
  0x29   : > { %p1657_p4 = scmp.lt.s32.totalorder %s1648_s27, %s1648_s27 }
  0x2a   : > { %p1651_p13 = pnand %p1649_p6, %p1613_p12 }
  0x2b   : > { %p1658_p5 = por %p1657_p4, %p1656_p1 }
  0x2c   : > { %p1652_p0 = pneg %p1651_p13 }
  0x2d   : > { %1501 = dma.hbm_to_vmem [thread:$0]  (!%p1967_p11), %s2271_s1, 256, %s295_s23, [#allocation8], %s1840_s15, %s1840_s15, %s1841_s16  }
  0x2e   : > { %p1659_p3 = pnand %p1658_p5, %p1652_p0 }
  0x30   : > { %1662 = shalt.err (!%p1659_p3)
}
  0x31   : > { %s2272_s3 = sld [smem:[#allocation23_spill]]  ;;  %s1674_s23 = scalar_lea.vmem %s327_s28, 256 }
  0x32   : > { %p1675_p10 = scmp.ne.s32.totalorder %s327_s28, %s1674_s23  ;;  %p1682_p9 = scmp.lt.s32.totalorder %s327_s28, %s327_s28 }
  0x33   : > { %p1683_p13 = scmp.lt.s32.totalorder %s1674_s23, %s1674_s23 }
  0x34   : > { %p1677_p7 = pnand %p1675_p10, %p1613_p12 }
  0x35   : > { %p1684_p8 = por %p1683_p13, %p1682_p9 }
  0x36   : > { %p1678_p6 = pneg %p1677_p7 }
  0x37   : > { %1504 = dma.hbm_to_vmem [thread:$0]  (!%p1967_p11), %s2272_s3, 256, %s311_s26, [#allocation8], %s1840_s15, %s1840_s15, %s1841_s16  }
  0x38   : > { %p1685_p1 = pnand %p1684_p8, %p1678_p6 }
  0x3a   : > { %1688 = shalt.err (!%p1685_p1)
}
  0x3b   : > { %s2273_s5 = sld [smem:[#allocation24_spill]]  ;;  %s50_s20 = sadd.s32 1, %s1823_s11 }
  0x3c   : > { %s43_s26 = sadd.s32 1, %s1831_s13  ;;  %p57_p4 = scmp.ne.s32.totalorder %s1823_s11, %s1819_s10 }
  0x3d   : > { %p45_p8 = scmp.ge.s32.totalorder %s43_s26, 2  ;;  %p58_p12 = scmp.eq.s32.totalorder %s1835_s14, 0 }
  0x3e   : > { %p2004_p0 = por %p1942_p2, %p57_p4  ;;  %p1522_p5 = scmp.lt.s32.totalorder %s1835_s14, 2 }
  0x3f   : > { %s2290_s26 = smov (%p45_p8, %s43_s26), 0  ;;  %p59_p3 = por %p58_p12, %p57_p4 }
  0x40   : > { %2275 = sst [smem:[#allocation21_spill]] %s2290_s26  ;;  %s343_s27 = sand.u32 1, %s1823_s11  }
  0x41   : > { %1507 = dma.hbm_to_vmem [thread:$0]  (!%p1967_p11), %s2273_s5, 256, %s327_s28, [#allocation11], %s1840_s15, %s1840_s15, %s1841_s16  }
  0x42   : > { %s47_s29 = ssub.s32 %s1831_s13, %s2290_s26  ;;  %s1345_s28 = sshll.u32 %s343_s27, 2 }
  0x43   : > { %p48_p10 = scmp.eq.s32.totalorder %s47_s29, 0  ;;  %s1346_s15 = sshll.u32 %s1831_s13, 6 }
  0x44   : > { %s352_s18 = scalar_lea.hbm %s2245_s0, %s1346_s15  ;;  %s347_s25 = scalar_lea.vmem [#allocation4], %s1345_s28 }
  0x45   : > { %s2016_s16 = scalar_select %p48_p10, %s1823_s11, %s50_s20  }
  0x46   : > { %s354_s1 = sshll.u32 %s347_s25, 4  ;;  %p2023_p2 = pnand %p1522_p5, %p59_p3  ;;  %s355_s1 = int_to_ptr.vmem [resolvable:$true] %s354_s1 }
  0x47   : > { %s344_s5 = scalar_lea.sflag [#allocation5], %s343_s27  ;;  %s1702_s29 = scalar_lea.vmem %s355_s1, 64 }
  0x48   : > { %p1691_p11 = pneg %p2023_p2  ;;  %p1703_p7 = scmp.ne.s32.totalorder %s355_s1, %s1702_s29 }
  0x49   : > { %s1842_s20 = smov [#allocation4]  }
  0x4a   : > { %p1705_p6 = pnand %p1703_p7, %p1691_p11  ;;  %s1707_s26 = sshll.u32 %s1842_s20, 4  ;;  %s1708_s26 = int_to_ptr.vmem [resolvable:$false] %s1707_s26 }
  0x4b   : > { %s1709_s15 = scalar_lea.vmem %s1708_s26, 128  ;;  %p1710_p13 = scmp.lt.s32.totalorder %s355_s1, %s1708_s26 }
  0x4c   : > { %p1706_p9 = pneg %p1705_p6  ;;  %p1711_p1 = scmp.lt.s32.totalorder %s1709_s15, %s1702_s29 }
  0x4e   : > { %p1712_p4 = por %p1711_p1, %p1710_p13 }
  0x50   : > { %p1713_p8 = pnand %p1712_p4, %p1706_p9 }
  0x52   : > { %1716 = shalt.err (!%p1713_p8)
}
  0x53   : > { %1511 = dma.hbm_to_vmem [thread:$0]  (!%p2023_p2), %s352_s18, 64, %s355_s1, %s344_s5  }
  0x54   : > { %p2277_p12 = scmp.ne.s32.totalorder %s2269_s21, 0 }
  0x55   : > { %s2034_s27 = sand.u32 (!%p2277_p12), 1, %s1819_s10   ;;  %p2278_p5 = scmp.ne.s32.totalorder (!%p2277_p12), %s2266_s19, 0 }
  0x56   : > { %369 = sbr.rel (%p2277_p12) target bundleno = 1284 (0x504), region = 52  ;;  %s1348_s28 = sshll.u32 (!%p2277_p12), %s2034_s27, 2 }
  0x57   : > { %s372_s23 = scalar_lea.sflag (!%p2277_p12), [#allocation5], %s2034_s27  ;;  %s375_s22 = scalar_lea.vmem (!%p2277_p12), [#allocation4], %s1348_s28 }
  0x5b   : > { %1794 = dma.done.wait (%p2278_p5), %s372_s23, 64  }
  0x5c   : > { %1796 = vsyncadd (%p2278_p5), %s372_s23, 4294967232  ;;  %p2279_p3 = scmp.ne.s32.totalorder %s2264_s17, 0 }
  0x5e   : > { %1798 = dma.done.wait (%p2279_p3), [#allocation8], 512  }
  0x5f   : > { %1800 = vsyncadd (%p2279_p3), [#allocation8], 4294966784 }
  0x60   : > { %1802 = dma.done.wait (%p2279_p3), [#allocation11], 256  }
  0x61   : > { %1804 = vsyncadd (%p2279_p3), [#allocation11], 4294967040  ;;  %v1843_v0 = vmov 0.0   ;;  %vm1844_vm0 = vmmov 0   ;;  %v1589_v1 = vld [vmem:[#allocation9 + $0x8] sm:$0xff]   ;;  %v1590_v2 = vld [vmem:[#allocation9] sm:$0xff]  }
  0x62   : > { %1408 = vmatprep.subr.bf16.mxu0 %v1843_v0  ;;  %1412 = vmatprep.mubr.msk.bf16.mxu0 %vm1844_vm0, %v1843_v0  ;;  %v438_v3 = vld [vmem:[%s375_s22] sm:$0xf]  ;;  %vm462_vm1 = vcmask 261120   ;;  %v1591_v4 = vld [vmem:[#allocation7 + $0x8] sm:$0xff]   ;;  %v1592_v5 = vld [vmem:[#allocation7] sm:$0xff]   ;;  %vm597_vm2 = vcmask 60416  }
  0x63   : > { %1416 = vmatprep.subr.bf16.mxu1 %v1843_v0  ;;  %1420 = vmatprep.mubr.msk.bf16.mxu1 %vm1844_vm0, %v1843_v0  ;;  %v619_v6 = vld [vmem:[%s375_s22] sm:$0xf]  ;;  %v1593_v7 = vld [vmem:[#allocation10 + $0x8] sm:$0xff]   ;;  %v1594_v8 = vld [vmem:[#allocation10] sm:$0xff]   ;;  %s1845_s5 = smov 104   ;;  %s1846_s17 = smov 120  }
  0x64   : > { %1409 = vmatpush3.bf16.msra.mxu0 %v1589_v1  ;;  %1417 = vmatpush3.bf16.msra.mxu1 %v1593_v7  ;;  %v1354_v9 = vld [vmem:[%s2249_s4] ss:$0 sm:$0xff]  ;;  %s1847_s26 = smov 112   ;;  %vm708_vm3 = vcmask 64512   ;;  %p430_p10 = scmp.lt.s32.totalorder %s1827_s12, 1  ;;  %vm948_vm4 = vcmask 1043456  }
  0x65   : > { %1410 = vmatprep.subr.bf16.mxu0 %v1843_v0  ;;  %1418 = vmatprep.subr.bf16.mxu1 %v1843_v0  ;;  %v1362_v16 = vld [vmem:[%s2247_s2] ss:$0 sm:$0xff]  ;;  %s1353_s23 = sshll.u32 %s2034_s27, 5  ;;  %s1382_s1 = sshll.u32 %s1827_s12, 9 }
  0x66   : > { %v1358_v25 = vld [vmem:[%s2251_s6] ss:$0 sm:$0xff]  ;;  %s431_s29 = scalar_select %p430_p10, %s1827_s12, 1 }
  0x67   : > { %s2140_s22 = scalar_lea.vmem [#allocation13], %s1353_s23  ;;  %s2168_s21 = scalar_lea.hbm %s2254_s9, %s1382_s1 }
  0x68   : > { %1411 = vmatpush3.bf16.msra.mxu0 %v1590_v2  ;;  %1419 = vmatpush3.bf16.msra.mxu1 %v1594_v8  ;;  %s432_s28 = scalar_lea.vmem %s2252_s7, %s431_s29  ;;  %s1182_s3 = sshll.u32 %s2140_s22, 4  ;;  %s2170_s3 = int_to_ptr.vmem [resolvable:$true] %s1182_s3 }
  0x69   : > { %1424 = vmatprep.subr.bf16.mxu0 %v1843_v0  ;;  %1432 = vmatprep.subr.bf16.mxu1 %v1843_v0  ;;  %v1366_v52 = vld [vmem:[%s432_s28] ss:$0 sm:$0xff]  ;;  %s1717_s18 = scalar_lea.vmem %s2170_s3, 512  ;;  %s1849_s25 = smov [#allocation13]  }
  0x6a   : > { %p1718_p2 = scmp.ne.s32.totalorder %s2170_s3, %s1717_s18  ;;  %s1721_s29 = sshll.u32 %s1849_s25, 4  ;;  %s1722_s29 = int_to_ptr.vmem [resolvable:$false] %s1721_s29 }
  0x6b   : > { %1413 = vmatmul.mubr.msk.bf16.vlgmr.msra.gmra.mxu0 %vm462_vm1, %v438_v3  ;;  %1421 = vmatmul.mubr.msk.bf16.vlgmr.msra.gmra.mxu1 %vm462_vm1, %v438_v3  ;;  %s1723_s20 = scalar_lea.vmem %s1722_s29, 1024  ;;  %p1724_p6 = scmp.lt.s32.totalorder %s2170_s3, %s1722_s29 }
  0x6c   : > { %1425 = vmatpush3.bf16.msra.mxu0 %v1591_v4  ;;  %1428 = vmatprep.mubr.msk.bf16.mxu0 %vm1844_vm0, %v1843_v0  ;;  %p1719_p11 = pnand %p1718_p2, %p2004_p0  ;;  %p1725_p9 = scmp.lt.s32.totalorder %s1723_s20, %s1717_s18 }
  0x6d   : > { %1426 = vmatprep.subr.bf16.mxu0 %v1843_v0  ;;  %1434 = vmatprep.mubr.msk.bf16.mxu1 %vm1844_vm0, %v1843_v0 }
  0x6e   : > { %p1720_p7 = pneg %p1719_p11  ;;  %p1726_p13 = por %p1725_p9, %p1724_p6 }
  0x70   : > { %1427 = vmatpush3.bf16.msra.mxu0 %v1592_v5  ;;  %p1727_p1 = pnand %p1726_p13, %p1720_p7 }
  0x71   : > { %1438 = vmatprep.subr.bf16.mxu0 %v1843_v0 }
  0x73   : > { %1429 = vmatmul.mubr.msk.bf16.vlgmr.msra.gmra.mxu0 %vm462_vm1, %v619_v6 }
  0x74   : > { %1440 = vmatprep.mubr.msk.bf16.mxu0 %vm1844_vm0, %v1843_v0 }
 0x12b   : > { %v500_v10 = vpop.f32.mrf.mxu0  ;;  %v563_v26 = vpop.f32.mrf.mxu1 }
 0x12c   : > { %v501_v11 = vadd.f32 %v1354_v9, %v500_v10  ;;  %v2092_v27 = vadd.f32 %v1358_v25, %v563_v26 }
 0x12d   : > { %v1414_v12 = vpop.f32.mrf.mxu0  ;;  %v1422_v28 = vpop.f32.mrf.mxu1 }
 0x12e   : > { %v579_v13 = vpack.c.bf16 %v501_v11, %v501_v11  ;;  %576 = vrot.lane.b32.xlu1 %v501_v11, %s1845_s5  ;;  %570 = vrot.lane.b32.xlu0 %v501_v11, %s1846_s17  ;;  %v593_v29 = vpack.c.bf16 %v2092_v27, %v2092_v27 }
 0x12f   : > { %v503_v14 = vpop.f32.mrf.mxu0  ;;  %v566_v30 = vpop.f32.mrf.mxu1 }
 0x130   : > { %598 = vst.msk [vmem:[#allocation2] sm:$0xf] %vm597_vm2, %v579_v13  ;;  %602 = vst.msk [vmem:[#allocation3] sm:$0xf] %vm597_vm2, %v593_v29 }
 0x131   : > { %v1415_v15 = vpop.f32.mrf.mxu0  ;;  %v1423_v31 = vpop.f32.mrf.mxu1 }
 0x132   : > { %573 = vrot.lane.b32.xlu0 %v501_v11, %s1847_s26 }
 0x133   : > { %v681_v17 = vpop.f32.mrf.mxu0 }
 0x134   : > { %v682_v18 = vadd.f32 %v1362_v16, %v681_v17 }
 0x135   : > { %v1430_v19 = vpop.f32.mrf.mxu0 }
 0x136   : > { %688 = vrot.lane.b32.xlu1 %v682_v18, %s1846_s17  ;;  %691 = vrot.lane.b32.xlu0 %v682_v18, %s1847_s26  ;;  %v697_v24 = vpack.c.bf16 %v682_v18, %v682_v18 }
 0x137   : > { %v684_v20 = vpop.f32.mrf.mxu0  ;;  %v606_v21 = vld [vmem:[#allocation2] sm:$0xf]  ;;  %v610_v50 = vld [vmem:[#allocation3] sm:$0xf] }
 0x138   : > { %v713_v22 = vsel %vm708_vm3, %v606_v21, 0  ;;  %v950_v51 = vsel %vm948_vm4, %v610_v50, 0 }
 0x139   : > { %1433 = vmatpush3.bf16.xpose.msra.mxu1 %v713_v22  ;;  %v1431_v23 = vpop.f32.mrf.mxu0 }
 0x13a   : > { %694 = vrot.lane.b32.xlu1 %v682_v18, %s1845_s5  ;;  %1444 = vmatprep.subr.bf16.mxu1 %v1843_v0 }
 0x140   : > { %1435 = vmatmul.mubr.msk.bf16.vlgmr.msra.gmra.mxu1 %vm708_vm3, %v697_v24 }
 0x141   : > { %1446 = vmatprep.mubr.msk.bf16.mxu1 %vm1844_vm0, %v1843_v0 }
 0x1a0   : > { %v577_v32 = vpop.permute.xlu1 %576  ;;  %v571_v33 = vpop.permute.xlu0 %570 }
 0x1a1   : > { %v582_v34 = vpack.c.bf16 %v577_v32, %v577_v32  ;;  %v580_v35 = vpack.c.bf16 %v571_v33, %v571_v33 }
 0x1a3   : > { %601 = vst.msk [vmem:[#allocation2 + $0xc] sm:$0xf] %vm597_vm2, %v582_v34  ;;  %599 = vst.msk [vmem:[#allocation2 + $0x4] sm:$0xf] %vm597_vm2, %v580_v35 }
 0x1a4   : > { %v574_v36 = vpop.permute.xlu0 %573 }
 0x1a5   : > { %v581_v37 = vpack.c.bf16 %v574_v36, %v574_v36 }
 0x1a7   : > { %600 = vst.msk [vmem:[#allocation2 + $0x8] sm:$0xf] %vm597_vm2, %v581_v37 }
 0x1a8   : > { %v689_v40 = vpop.permute.xlu1 %688  ;;  %v692_v45 = vpop.permute.xlu0 %691 }
 0x1a9   : > { %v698_v42 = vpack.c.bf16 %v689_v40, %v689_v40  ;;  %v699_v47 = vpack.c.bf16 %v692_v45, %v692_v45 }
 0x1aa   : > { %v607_v38 = vld [vmem:[#allocation2 + $0x4] sm:$0xf]  ;;  %v609_v44 = vld [vmem:[#allocation2 + $0xc] sm:$0xf] }
 0x1ab   : > { %v759_v39 = vsel %vm708_vm3, %v607_v38, 0  ;;  %v851_v46 = vsel %vm708_vm3, %v609_v44, 0 }
 0x1ac   : > { %1439 = vmatpush3.bf16.xpose.msra.mxu0 %v759_v39  ;;  %v695_v48 = vpop.permute.xlu1 %694 }
 0x1ad   : > { %1450 = vmatprep.subr.bf16.mxu0 %v1843_v0  ;;  %v700_v49 = vpack.c.bf16 %v695_v48, %v695_v48 }
 0x1ae   : > { %v608_v41 = vld [vmem:[#allocation2 + $0x8] sm:$0xf] }
 0x1af   : > { %v805_v43 = vsel %vm708_vm3, %v608_v41, 0 }
 0x1b0   : > { %1445 = vmatpush3.bf16.xpose.msra.mxu1 %v805_v43 }
 0x1b1   : > { %1456 = vmatprep.subr.bf16.mxu1 %v1843_v0 }
 0x1b3   : > { %1441 = vmatmul.mubr.msk.bf16.vlgmr.msra.gmra.mxu0 %vm708_vm3, %v698_v42 }
 0x1b4   : > { %1451 = vmatpush3.bf16.xpose.msra.mxu0 %v851_v46  ;;  %1452 = vmatprep.mubr.msk.bf16.mxu0 %vm1844_vm0, %v1843_v0 }
 0x1b5   : > { %1462 = vmatprep.subr.bf16.mxu0 %v1843_v0 }
 0x1b7   : > { %1447 = vmatmul.mubr.msk.bf16.vlgmr.msra.gmra.mxu1 %vm708_vm3, %v699_v47 }
 0x1b8   : > { %1458 = vmatprep.mubr.msk.bf16.mxu1 %vm1844_vm0, %v1843_v0  ;;  %1457 = vmatpush3.bf16.msra.mxu1 %v950_v51 }
 0x1b9   : > { %1468 = vmatprep.subr.bf16.mxu1 %v1843_v0 }
 0x1bb   : > { %1453 = vmatmul.mubr.msk.bf16.vlgmr.msra.gmra.mxu0 %vm708_vm3, %v700_v49 }
 0x1bc   : > { %1464 = vmatprep.mubr.msk.bf16.mxu0 %vm1844_vm0, %v1843_v0 }
 0x200   : > { %v749_v53 = vpop.f32.mrf.mxu1 }
 0x201   : > { %v750_v54 = vadd.f32 %v1366_v52, %v749_v53 }
 0x202   : > { %v1436_v55 = vpop.f32.mrf.mxu1 }
 0x203   : > { %v893_v56 = vsel %vm708_vm3, %v750_v54, -inf }
 0x204   : > { %894 = vmax.xlane.f32.xlu0 %v893_v56  ;;  %v752_v57 = vpop.f32.mrf.mxu1 }
 0x206   : > { %v1437_v58 = vpop.f32.mrf.mxu1 }
 0x273   : > { %v795_v59 = vpop.f32.mrf.mxu0 }
 0x274   : > { %v796_v60 = vadd.f32 %v1366_v52, %v795_v59 }
 0x275   : > { %v1442_v61 = vpop.f32.mrf.mxu0 }
 0x276   : > { %v896_v62 = vsel %vm708_vm3, %v796_v60, -inf }
 0x277   : > { %v841_v63 = vpop.f32.mrf.mxu1  ;;  %897 = vmax.xlane.f32.xlu1 %v896_v62  ;;  %v798_v1 = vpop.f32.mrf.mxu0 }
 0x278   : > { %v842_v2 = vadd.f32 %v1366_v52, %v841_v63 }
 0x279   : > { %v1443_v3 = vpop.f32.mrf.mxu0  ;;  %v1448_v4 = vpop.f32.mrf.mxu1 }
 0x27a   : > { %v899_v5 = vsel %vm708_vm3, %v842_v2, -inf }
 0x27b   : > { %900 = vmax.xlane.f32.xlu0 %v899_v5  ;;  %v844_v6 = vpop.f32.mrf.mxu1  ;;  %v887_v7 = vpop.f32.mrf.mxu0 }
 0x27c   : > { %v888_v8 = vadd.f32 %v1366_v52, %v887_v7 }
 0x27d   : > { %v1449_v9 = vpop.f32.mrf.mxu1  ;;  %v1454_v10 = vpop.f32.mrf.mxu0 }
 0x27e   : > { %v902_v11 = vsel %vm708_vm3, %v888_v8, -inf }
 0x27f   : > { %903 = vmax.xlane.f32.xlu0 %v902_v11  ;;  %v890_v12 = vpop.f32.mrf.mxu0 }
 0x281   : > { %v1455_v13 = vpop.f32.mrf.mxu0 }
 0x288   : > { %584 = vrot.lane.b32.xlu1 %v2092_v27, %s1846_s17 }
 0x28d   : > { %v895_v14 = vpop.xlane.xlu0 %894 }
 0x28e   : > { %v905_v15 = vsub.f32 %v750_v54, %v895_v14 }
 0x290   : > { %v909_v16 = vmul.f32 1.442695, %v905_v15 }
 0x292   : > { %1595 = vpow2.f32 %v909_v16 }
 0x29f   : > { %v1596_v17 = vpop.eup %1595 }
 0x2a0   : > { %v917_v18 = vsel %vm708_vm3, %v1596_v17, 0.0 }
 0x2ac   : > { %918 = vadd.xlane.f32.xlu1 %v917_v18 }
 0x300   : > { %v898_v19 = vpop.xlane.xlu1 %897 }
 0x301   : > { %v906_v20 = vsub.f32 %v796_v60, %v898_v19 }
 0x303   : > { %v911_v21 = vmul.f32 1.442695, %v906_v20 }
 0x304   : > { %v901_v22 = vpop.xlane.xlu0 %900  ;;  %v585_v23 = vpop.permute.xlu1 %584 }
 0x305   : > { %1597 = vpow2.f32 %v911_v21  ;;  %v907_v24 = vsub.f32 %v842_v2, %v901_v22  ;;  %v594_v25 = vpack.c.bf16 %v585_v23, %v585_v23 }
 0x307   : > { %v913_v26 = vmul.f32 1.442695, %v907_v24  ;;  %603 = vst.msk [vmem:[#allocation3 + $0x4] sm:$0xf] %vm597_vm2, %v594_v25 }
 0x308   : > { %v904_v28 = vpop.xlane.xlu0 %903 }
 0x309   : > { %1599 = vpow2.f32 %v913_v26  ;;  %v908_v29 = vsub.f32 %v888_v8, %v904_v28 }
 0x30b   : > { %v915_v30 = vmul.f32 1.442695, %v908_v29 }
 0x30d   : > { %1601 = vpow2.f32 %v915_v30 }
 0x30e   : > { %v611_v31 = vld [vmem:[#allocation3 + $0x4] sm:$0xf] }
 0x30f   : > { %v996_v32 = vsel %vm948_vm4, %v611_v31, 0 }
 0x310   : > { %1463 = vmatpush3.bf16.msra.mxu0 %v996_v32 }
 0x311   : > { %1474 = vmatprep.subr.bf16.mxu0 %v1843_v0 }
 0x312   : > { %v1598_v33 = vpop.eup %1597 }
 0x313   : > { %v920_v34 = vsel %vm708_vm3, %v1598_v33, 0.0 }
 0x314   : > { %921 = vadd.xlane.f32.xlu0 %v920_v34 }
 0x316   : > { %v1600_v35 = vpop.eup %1599 }
 0x317   : > { %v923_v36 = vsel %vm708_vm3, %v1600_v35, 0.0 }
 0x318   : > { %924 = vadd.xlane.f32.xlu1 %v923_v36 }
 0x31a   : > { %v1602_v37 = vpop.eup %1601 }
 0x31b   : > { %v926_v38 = vsel %vm708_vm3, %v1602_v37, 0.0 }
 0x31c   : > { %927 = vadd.xlane.f32.xlu0 %v926_v38 }
 0x329   : > { %590 = vrot.lane.b32.xlu1 %v2092_v27, %s1845_s5  ;;  %s1848_s5 = smov 8  }
 0x332   : > { %587 = vrot.lane.b32.xlu0 %v2092_v27, %s1847_s26  ;;  %s1154_s26 = scalar_lea.sflag [#allocation14], %s2034_s27 }
 0x335   : > { %v919_v39 = vpop.xlane.xlu1 %918 }
 0x336   : > { %1603 = vrcp.f32 %v919_v39 }
 0x343   : > { %v1604_v40 = vpop.eup %1603 }
 0x344   : > { %v933_v41 = vmul.f32 %v1604_v40, %v1596_v17 }
 0x346   : > { %937 = vst.msk [vmem:[%s2140_s22] sm:$0xff] %vm708_vm3, %v933_v41  ;;  %v941_v42 = vpack.c.bf16 %v933_v41, %v933_v41 }
 0x348   : > { %1459 = vmatmul.mubr.msk.bf16.vlgmr.msra.gmra.mxu1 %vm708_vm3, %v941_v42 }
 0x349   : > { %1470 = vmatprep.mubr.msk.bf16.mxu1 %vm1844_vm0, %v1843_v0 }
 0x39d   : > { %v922_v43 = vpop.xlane.xlu0 %921 }
 0x39e   : > { %1605 = vrcp.f32 %v922_v43 }
 0x3a1   : > { %v925_v27 = vpop.xlane.xlu1 %924 }
 0x3a2   : > { %1607 = vrcp.f32 %v925_v27 }
 0x3a5   : > { %v591_v44 = vpop.permute.xlu1 %590  ;;  %v928_v45 = vpop.xlane.xlu0 %927 }
 0x3a6   : > { %v596_v46 = vpack.c.bf16 %v591_v44, %v591_v44  ;;  %1609 = vrcp.f32 %v928_v45 }
 0x3a8   : > { %605 = vst.msk [vmem:[#allocation3 + $0xc] sm:$0xf] %vm597_vm2, %v596_v46 }
 0x3a9   : > { %v588_v47 = vpop.permute.xlu0 %587 }
 0x3aa   : > { %v595_v48 = vpack.c.bf16 %v588_v47, %v588_v47 }
 0x3ab   : > { %v1606_v49 = vpop.eup %1605 }
 0x3ac   : > { %604 = vst.msk [vmem:[#allocation3 + $0x8] sm:$0xf] %vm597_vm2, %v595_v48  ;;  %v934_v50 = vmul.f32 %v1606_v49, %v1598_v33 }
 0x3ae   : > { %938 = vst.msk [vmem:[%s2140_s22 + $0x8] sm:$0xff] %vm708_vm3, %v934_v50  ;;  %v942_v51 = vpack.c.bf16 %v934_v50, %v934_v50 }
 0x3af   : > { %v1608_v52 = vpop.eup %1607  ;;  %v613_v53 = vld [vmem:[#allocation3 + $0xc] sm:$0xf] }
 0x3b0   : > { %1465 = vmatmul.mubr.msk.bf16.vlgmr.msra.gmra.mxu0 %vm708_vm3, %v942_v51  ;;  %v1088_v54 = vsel %vm948_vm4, %v613_v53, 0  ;;  %v935_v55 = vmul.f32 %v1608_v52, %v1600_v35 }
 0x3b1   : > { %1475 = vmatpush3.bf16.msra.mxu0 %v1088_v54  ;;  %1476 = vmatprep.mubr.msk.bf16.mxu0 %vm1844_vm0, %v1843_v0 }
 0x3b2   : > { %939 = vst.msk [vmem:[%s2140_s22 + $0x10] sm:$0xff] %vm708_vm3, %v935_v55  ;;  %v943_v60 = vpack.c.bf16 %v935_v55, %v935_v55 }
 0x3b3   : > { %v1610_v56 = vpop.eup %1609  ;;  %v612_v57 = vld [vmem:[#allocation3 + $0x8] sm:$0xf] }
 0x3b4   : > { %v1042_v58 = vsel %vm948_vm4, %v612_v57, 0  ;;  %v936_v59 = vmul.f32 %v1610_v56, %v1602_v37 }
 0x3b5   : > { %1469 = vmatpush3.bf16.msra.mxu1 %v1042_v58 }
 0x3b6   : > { %940 = vst.msk [vmem:[%s2140_s22 + $0x18] sm:$0xff] %vm708_vm3, %v936_v59  ;;  %v944_v61 = vpack.c.bf16 %v936_v59, %v936_v59 }
 0x3b8   : > { %1471 = vmatmul.mubr.msk.bf16.vlgmr.msra.gmra.mxu1 %vm708_vm3, %v943_v60  ;;  %1477 = vmatmul.mubr.msk.bf16.vlgmr.msra.gmra.mxu0 %vm708_vm3, %v944_v61 }
 0x408   : > { %v986_v0 = vpop.f32.mrf.mxu1 }
 0x40a   : > { %v1460_v62 = vpop.f32.mrf.mxu1 }
 0x40c   : > { %v989_v63 = vpop.f32.mrf.mxu1 }
 0x40e   : > { %v1461_v1 = vpop.f32.mrf.mxu1 }
 0x470   : > { %v1032_v2 = vpop.f32.mrf.mxu0 }
 0x471   : > { %1131 = vrot.lane.b32.xlu1 %v1032_v2, %s1848_s5 }
 0x472   : > { %v1466_v3 = vpop.f32.mrf.mxu0 }
 0x473   : > { %1730 = shalt.err (!%p1727_p1)
}
 0x474   : > { %s1731_s15 = scalar_lea.hbm %s2168_s21, 512  ;;  %s1735_s22 = scalar_lea.hbm %s2254_s9, 1024 }
 0x475   : > { %p1732_p4 = scmp.ne.s32.totalorder %s2168_s21, %s1731_s15  ;;  %p1736_p5 = scmp.lt.s32.totalorder %s2168_s21, %s2254_s9 }
 0x476   : > { %p1737_p3 = scmp.lt.s32.totalorder %s1735_s22, %s1731_s15 }
 0x477   : > { %p1733_p8 = pnand %p1732_p4, %p2004_p0 }
 0x478   : > { %p1738_p10 = por %p1737_p3, %p1736_p5 }
 0x479   : > { %p1734_p12 = pneg %p1733_p8 }
 0x47b   : > { %p1739_p2 = pnand %p1738_p10, %p1734_p12 }
 0x47d   : > { %1742 = shalt.err (!%p1739_p2)
}
 0x47e   : > { %s1850_s19 = smov 128   ;;  %v1035_v4 = vpop.f32.mrf.mxu0  ;;  %v1078_v6 = vpop.f32.mrf.mxu1  ;;  %s1851_s18 = smov 16   ;;  %vm1143_vm5 = vcmask 130048   ;;  %vm1145_vm6 = vcmask 195584  }
 0x47f   : > { %1495 = dma.vmem_to_hbm [thread:$0]  (%p2004_p0), %s2170_s3, 512, %s2168_s21, %s1154_s26, %s1850_s19, %s1850_s19, %s1848_s5  }
 0x480   : > { %v1467_v5 = vpop.f32.mrf.mxu0  ;;  %1135 = vrot.lane.b32.xlu0 %v1078_v6, %s1851_s18  ;;  %s1852_s25 = smov 24   ;;  %v1472_v8 = vpop.f32.mrf.mxu1  ;;  %s1352_s29 = sshll.u32 %s2034_s27, 3 }
 0x481   : > { %s1377_s3 = sshll.u32 %s1827_s12, 7  ;;  %s422_s5 = scalar_lea.vmem [#allocation12], %s1352_s29 }
 0x482   : > { %v1124_v7 = vpop.f32.mrf.mxu0  ;;  %v1081_v10 = vpop.f32.mrf.mxu1  ;;  %s1168_s21 = sshll.u32 %s422_s5, 4  ;;  %s2202_s15 = scalar_lea.hbm %s2253_s8, %s1377_s3  ;;  %s1169_s21 = int_to_ptr.vmem [resolvable:$true] %s1168_s21 }
 0x483   : > { %1139 = vrot.lane.b32.xlu1 %v1124_v7, %s1852_s25  ;;  %s1149_s28 = scalar_lea.sflag [#allocation6], %s2034_s27  ;;  %s1743_s23 = scalar_lea.vmem %s1169_s21, 128 }
 0x484   : > { %v1478_v9 = vpop.f32.mrf.mxu0  ;;  %v1473_v12 = vpop.f32.mrf.mxu1  ;;  %p1744_p11 = scmp.ne.s32.totalorder %s1169_s21, %s1743_s23  ;;  %s1853_s12 = smov [#allocation12]  }
 0x485   : > { %s1747_s22 = sshll.u32 %s1853_s12, 4  ;;  %s1748_s22 = int_to_ptr.vmem [resolvable:$false] %s1747_s22 }
 0x486   : > { %v1127_v11 = vpop.f32.mrf.mxu0  ;;  %p1745_p7 = pnand %p1744_p11, %p2004_p0  ;;  %s1749_s1 = scalar_lea.vmem %s1748_s22, 256 }
 0x487   : > { %p1750_p9 = scmp.lt.s32.totalorder %s1169_s21, %s1748_s22  ;;  %p1751_p13 = scmp.lt.s32.totalorder %s1749_s1, %s1743_s23 }
 0x488   : > { %v1479_v13 = vpop.f32.mrf.mxu0  ;;  %p1746_p6 = pneg %p1745_p7 }
 0x489   : > { %p1752_p1 = por %p1751_p13, %p1750_p9 }
 0x48b   : > { %p1753_p4 = pnand %p1752_p1, %p1746_p6 }
 0x4e3   : > { %v1132_v14 = vpop.permute.xlu1 %1131 }
 0x4e4   : > { %v1142_v15 = vsel %vm708_vm3, %v986_v0, %v1132_v14 }
 0x4f2   : > { %v1136_v16 = vpop.permute.xlu0 %1135 }
 0x4f3   : > { %v1144_v18 = vsel %vm1143_vm5, %v1142_v15, %v1136_v16 }
 0x4f5   : > { %v1140_v17 = vpop.permute.xlu1 %1139 }
 0x4f6   : > { %v1146_v19 = vsel %vm1145_vm6, %v1144_v18, %v1140_v17 }
 0x4f7   : > { %1147 = vst.msk [vmem:[%s422_s5] sm:$0xff] %vm462_vm1, %v1146_v19 }
 0x4f8   : > { %1756 = shalt.err (!%p1753_p4)
}
 0x4f9   : > { %s1757_s17 = scalar_lea.hbm %s2202_s15, 128  ;;  %s1761_s18 = scalar_lea.hbm %s2253_s8, 256 }
 0x4fa   : > { %p1758_p8 = scmp.ne.s32.totalorder %s2202_s15, %s1757_s17  ;;  %p1762_p3 = scmp.lt.s32.totalorder %s2202_s15, %s2253_s8 }
 0x4fb   : > { %p1763_p10 = scmp.lt.s32.totalorder %s1761_s18, %s1757_s17 }
 0x4fc   : > { %p1759_p12 = pnand %p1758_p8, %p2004_p0 }
 0x4fd   : > { %p1764_p2 = por %p1763_p10, %p1762_p3 }
 0x4fe   : > { %p1760_p5 = pneg %p1759_p12 }
 0x500   : > { %p1765_p11 = pnand %p1764_p2, %p1760_p5 }
 0x502   : > { %1768 = shalt.err (!%p1765_p11)
}
 0x503   : > { %1494 = dma.vmem_to_hbm [thread:$0]  (%p2004_p0), %s1169_s21, 128, %s2202_s15, %s1149_s28  }
 0x504 PF: > { %s2280_s3 = sld [smem:[#allocation20_spill]]  ;;  %s1197_s5 = sand.u32 1, %s1815_s30  }
 0x505   : > { %p2282_p6 = scmp.ge.s32.totalorder %s1835_s14, 2  ;;  %s1198_s26 = scalar_lea.sflag [#allocation6], %s1197_s5 }
 0x50a   : > { %p2281_p7 = scmp.ne.s32.totalorder %s2280_s3, 0 }
 0x50c   : > { %p1513_p9 = pnand %p2282_p6, %p2281_p7 }
 0x50e   : > { %p1514_p13 = pneg %p1513_p9 }
 0x510   : > { %1806 = dma.done.wait (%p1514_p13), %s1198_s26, 128  }
 0x511   : > { %1808 = vsyncadd (%p1514_p13), %s1198_s26, 4294967168  ;;  %s1207_s20 = scalar_lea.sflag [#allocation14], %s1197_s5 }
 0x512   : > { %1810 = dma.done.wait (%p1514_p13), %s1207_s20, 512  }
 0x513   : > { %1812 = vsyncadd (%p1514_p13), %s1207_s20, 4294966784  ;;  %s31_s14 = sadd.s32 1, %s1835_s14   ;;  %s2283_s24 = sld [smem:[#allocation21_spill]] }
 0x514   : > { %p28_p1 = scmp.ge.s32.totalorder %s31_s14, 4   ;;  %s2284_s30 = smov %s1819_s10 }
 0x515   : > { %s2285_s10 = smov %s1823_s11  ;;  %s2286_s11 = smov %s2016_s16 }
 0x516   : > { %s2287_s12 = smov %s1831_s13  ;;  %30 = sbr.rel (!%p28_p1) target bundleno = 14 (0xe), region = 134 }
 0x519   : > { %s2288_s13 = smov %s2283_s24 }
 0x51b   :  { %1212 = vsyncpa [#allocation5], 1 }
 0x51c   :  { %1214 = vsyncpa [#allocation5 + $0x1], 1 }
 0x51d   :  { %1215 = vsyncpa [#allocation8], 1 }
 0x51e   :  { %1216 = vsyncpa [#allocation11], 1 }
 0x51f   :  { %1217 = vsyncpa [#allocation6], 1 }
 0x520   :  { %1219 = vsyncpa [#allocation6 + $0x1], 1 }
 0x521   :  { %1220 = vsyncpa [#allocation14], 1 }
 0x522   :  { %1222 = vsyncpa [#allocation14 + $0x1], 1 }

</bundles_post_ra>
